<compile_context>
chip_gen: v5e
topology: v5e:2x2
jax: 0.10.0
libtpu: 0.0.40
codegen_flags: <defaults>
</compile_context>

<pallas_src>
import functools

import jax
import jax.numpy as jnp
from jax.experimental import pallas as pl
from jax.experimental.pallas import tpu as pltpu

EMBED = 32               # d (embed_dim)
HEADS = 4
HEAD_DIM = EMBED // HEADS
FF = EMBED               # feedforward_dim defaults to embed_dim in the tnp layers
NEG_INF = -1e30


def _layernorm(x, gamma, beta, eps=1e-5):
    mu = jnp.mean(x, axis=-1, keepdims=True)
    xc = x - mu
    var = jnp.mean(xc * xc, axis=-1, keepdims=True)
    return xc * jax.lax.rsqrt(var + eps) * gamma + beta


def _unpack(w_slab, v_slab):
    """Slice the packed parameter slabs once (hoisted out of the layer loop).

    w_slab: (d, 6d) bf16 = [wq*scale | wk | wv | wo | w1 | w2]
    v_slab: (8, 3d) f32 rows = [bq*scale|bk|bv; bo; b1; b2; g1; be1; g2; be2]
    Bias / LN rows are kept 2-D (1, n) so no per-layer re-broadcasts are emitted.
    """
    d = EMBED
    return dict(
        wqkv=w_slab[:, 0 * d:3 * d],              # (d, 3d)
        wq=w_slab[:, 0 * d:1 * d],                # (d, d)
        wkv=w_slab[:, 1 * d:3 * d],               # (d, 2d)
        wo=w_slab[:, 3 * d:4 * d],                # (d, d)
        w1=w_slab[:, 4 * d:4 * d + FF],           # (d, FF)
        w2=w_slab[:, 4 * d + FF:4 * d + FF + d],  # (FF, d)  (FF == d)
        bqkv=v_slab[0:1, :3 * d], bq=v_slab[0:1, :d], bkv=v_slab[0:1, d:3 * d],
        bo=v_slab[1:2, :d], b1=v_slab[2:3, :FF], b2=v_slab[3:4, :d],
        g1=v_slab[4:5, :d], be1=v_slab[5:6, :d],
        g2=v_slab[6:7, :d], be2=v_slab[7:8, :d],
    )


def _split_heads(x):
    """(R, d) -> (HEADS, R, hd) via lane slices + leading-dim stack."""
    return jnp.stack(
        [x[:, h * HEAD_DIM:(h + 1) * HEAD_DIM] for h in range(HEADS)], axis=0)


def _attn_block(xq, xkv, bias, p, *, fused_qkv):
    """Post-norm transformer attention layer (eval mode, dropout p=0).

    xq: (Rq, d) f32, xkv: (Rk, d) f32,
    bias: (HEADS, Rq, Rk) additive f32 score bias, or None (attend to all).
    Weights in `p` are bf16; accumulation and elementwise math are f32.
    """
    d = EMBED
    bf = jnp.bfloat16

    if fused_qkv:
        # One MXU push for Q|K|V (96 of 128 output lanes); 1/sqrt(hd) pre-folded.
        qkv = jnp.dot(xq.astype(bf), p["wqkv"],
                      preferred_element_type=jnp.float32) + p["bqkv"]   # (Rq, 3d)
        q, k, v = qkv[:, :d], qkv[:, d:2 * d], qkv[:, 2 * d:]
    else:
        # Cross-attention: Q from xq, K|V fused from xkv.
        q = jnp.dot(xq.astype(bf), p["wq"],
                    preferred_element_type=jnp.float32) + p["bq"]       # (Rq, d)
        kv = jnp.dot(xkv.astype(bf), p["wkv"],
                     preferred_element_type=jnp.float32) + p["bkv"]     # (Rk, 2d)
        k, v = kv[:, :d], kv[:, d:]

    # Head-batched attention: two batched dot_generals instead of eight
    # per-head lane-sliced matmuls.
    q3 = _split_heads(q.astype(bf))          # (H, Rq, hd)
    k3 = _split_heads(k.astype(bf))          # (H, Rk, hd)
    v3 = _split_heads(v.astype(bf))          # (H, Rk, hd)

    s = jnp.einsum("hqd,hkd->hqk", q3, k3,
                   preferred_element_type=jnp.float32)                  # (H, Rq, Rk)
    if bias is not None:
        s = s + bias
    s = s - jnp.max(s, axis=-1, keepdims=True)
    e = jnp.exp(s)
    # TODO(synk): approx reciprocal (EUP) will not bit-match PyTorch softmax.
    pr = e * pl.reciprocal(jnp.sum(e, axis=-1, keepdims=True), approx=True)
    o3 = jnp.einsum("hqk,hkd->hqd", pr.astype(bf), v3,
                    preferred_element_type=jnp.float32)                 # (H, Rq, hd)

    # Merge heads (lane concat) and do ONE (Rq, d) @ (d, d) output projection.
    o = jnp.concatenate([o3[h] for h in range(HEADS)], axis=-1)         # (Rq, d)
    attn = jnp.dot(o.astype(bf), p["wo"],
                   preferred_element_type=jnp.float32) + p["bo"]

    # Residual + norm1, ReLU feedforward, residual + norm2 (post-norm).
    x = _layernorm(xq + attn, p["g1"], p["be1"])
    ff_h = jnp.maximum(
        jnp.dot(x.astype(bf), p["w1"], preferred_element_type=jnp.float32)
        + p["b1"], 0.0)
    y = jnp.dot(ff_h.astype(bf), p["w2"],
                preferred_element_type=jnp.float32) + p["b2"]
    return _layernorm(x + y, p["g2"], p["be2"])


def _encoder_kernel(xc_ref, xt_ref, mask_ref,
                    w_sa_ref, v_sa_ref, w_ca_ref, v_ca_ref,
                    out_ref, *, num_layers):
    """Whole encoder stack for ONE batch element (grid axis = batch)."""
    xc = xc_ref[...].astype(jnp.float32)      # (nc, d)
    xt = xt_ref[...].astype(jnp.float32)      # (nt, d)
    nc = xc.shape[0]

    # Additive score bias from the user mask (nonzero = attend), broadcast
    # across heads ONCE (hoisted out of the unrolled layer loop).
    # TODO(synk): fully-masked rows give a uniform distribution, not PyTorch NaNs.
    attend = mask_ref[...] != 0.0
    sa_bias = jnp.broadcast_to(
        jnp.where(attend, 0.0, NEG_INF).astype(jnp.float32)[None],
        (HEADS, nc, nc))

    # Unpack parameter slabs once. _get_clones deep-copies one initialized
    # module, so every layer shares the same parameters.
    # TODO(synk): a trained checkpoint has distinct per-layer weights; add a
    # (num_layers, ...) leading axis to the slabs for that case.
    p_sa = _unpack(w_sa_ref[...], v_sa_ref[...])
    p_ca = _unpack(w_ca_ref[...], v_ca_ref[...])

    # num_layers is small and static -> unroll for full scheduler visibility.
    # TODO(synk): switch to lax.fori_loop(..., unroll=True) if num_layers grows
    # enough that unrolled per-layer temporaries start spilling vregs.
    for _ in range(num_layers):
        xc = _attn_block(xc, xc, sa_bias, p_sa, fused_qkv=True)   # MHSA on xc
        xt = _attn_block(xt, xc, None, p_ca, fused_qkv=False)     # MHCA xt <- xc

    # TODO(synk): for large m*nt present a lane-dense (rows*d/128, 128) output
    # slab instead of a 32-wide last dim (avoids masked vst partial stores).
    out_ref[...] = xt.astype(out_ref.dtype)


def tnp_transformer_masked_encoder(xc, xt, mask, mhsa_params, mhca_params,
                                   num_layers):
    """Matches TNPTransformerMaskedEncoder.forward (mhsa_layer provided).

    xc: (m, nc, d), xt: (m, nt, d), mask: (m, nc, nc), nonzero = attend.
    mhsa_params / mhca_params are (w_slab, v_slab) pairs from init_layer_params.
    """
    m, nc, d = xc.shape
    nt = xt.shape[1]
    assert d == EMBED
    w_sa, v_sa = mhsa_params
    w_ca, v_ca = mhca_params

    mask_f = (jnp.ones((m, nc, nc), jnp.float32) if mask is None
              else jnp.asarray(mask, jnp.float32))

    kernel = functools.partial(_encoder_kernel, num_layers=num_layers)
    batch_blk = lambda b: (b, 0, 0)
    whole = lambda b: (0, 0)

    out = pl.pallas_call(
        kernel,
        out_shape=jax.ShapeDtypeStruct((m, nt, d), xt.dtype),
        grid=(m,),
        in_specs=[
            pl.BlockSpec((None, nc, d), batch_blk),    # xc[b]
            pl.BlockSpec((None, nt, d), batch_blk),    # xt[b]
            pl.BlockSpec((None, nc, nc), batch_blk),   # mask[b]
            pl.BlockSpec(w_sa.shape, whole),           # shared weight slabs:
            pl.BlockSpec(v_sa.shape, whole),           # constant block index ->
            pl.BlockSpec(w_ca.shape, whole),           # stay VMEM-resident
            pl.BlockSpec(v_ca.shape, whole),
        ],
        out_specs=pl.BlockSpec((None, nt, d), batch_blk),
        # "parallel": v7x's two TensorCores split the batch; harmless on the
        # single-TC v5e / v6e.  For long sequences, also set
        # pltpu.CompilerParams(vmem_limit_bytes=...) and kv-tile the scores.
        compiler_params=pltpu.CompilerParams(
            dimension_semantics=("parallel",)),
    )(xc, xt, mask_f, w_sa, v_sa, w_ca, v_ca)
    return out


def init_layer_params(key, d=EMBED, ff=FF):
    """Packed parameters for one attention layer (shared across clones).

    w_slab: (d, 6d) bf16 = [wq*scale | wk | wv | wo | w1 | w2]  (requires ff == d)
    v_slab: (8, 3d) f32 rows = [bq*scale|bk|bv; bo; b1; b2; g1; be1; g2; be2]
    The 1/sqrt(head_dim) attention scale is folded into wq / bq here so the
    kernel never multiplies by it.
    """
    assert ff == d, "packing assumes feedforward_dim == embed_dim (tnp default)"
    ks = jax.random.split(key, 6)
    s = 0.05
    scale = 1.0 / (HEAD_DIM ** 0.5)
    wq = s * jax.random.normal(ks[0], (d, d), jnp.float32) * scale
    wk = s * jax.random.normal(ks[1], (d, d), jnp.float32)
    wv = s * jax.random.normal(ks[2], (d, d), jnp.float32)
    wo = s * jax.random.normal(ks[3], (d, d), jnp.float32)
    w1 = s * jax.random.normal(ks[4], (d, ff), jnp.float32)
    w2 = s * jax.random.normal(ks[5], (ff, d), jnp.float32)
    w_slab = jnp.concatenate([wq, wk, wv, wo, w1, w2],
                             axis=1).astype(jnp.bfloat16)           # (d, 6d)
    v_slab = jnp.zeros((8, 3 * d), jnp.float32)                     # biases = 0
    # (bq, in row 0 cols [:d], would also be scaled by `scale` if nonzero.)
    v_slab = v_slab.at[4, :d].set(1.0).at[6, :d].set(1.0)           # LN gammas = 1
    return w_slab, v_slab


# TODO(synk): dropout inside the attention/FF blocks is omitted (eval mode, p=0).

if __name__ == "__main__":
    key = jax.random.PRNGKey(0)
    k_xc, k_xt, k_sa, k_ca = jax.random.split(key, 4)

    m, nc, nt = 2, 8, 8
    num_layers = 2

    xc = jax.random.normal(k_xc, (m, nc, EMBED), jnp.float32)
    xt = jax.random.normal(k_xt, (m, nt, EMBED), jnp.float32)
    # Deterministic lower-triangular mask (nonzero == attend).
    tri = jnp.tril(jnp.ones((nc, nc), jnp.float32))
    mask = jnp.broadcast_to(tri, (m, nc, nc))

    # _get_clones deep-copies one module -> every layer shares these params.
    mhsa_params = init_layer_params(k_sa)
    mhca_params = init_layer_params(k_ca)

    fwd = jax.jit(functools.partial(tnp_transformer_masked_encoder,
                                    num_layers=num_layers))
    out = fwd(xc, xt, mask, mhsa_params, mhca_params)
    jax.block_until_ready(out)

    assert out.shape == (m, nt, EMBED), out.shape
    assert bool(jnp.all(jnp.isfinite(out)))
    print("KERNEL_OK")
</pallas_src>

<mosaic_0001>
module attributes {stable_mosaic.version = 11 : i64} {
  func.func @_encoder_kernel(%arg0: i32, %arg1: memref<1x8x32xf32, #tpu.memory_space<vmem>>, %arg2: memref<1x8x32xf32, #tpu.memory_space<vmem>>, %arg3: memref<1x8x8xf32, #tpu.memory_space<vmem>>, %arg4: memref<32x192xbf16, #tpu.memory_space<vmem>>, %arg5: memref<8x96xf32, #tpu.memory_space<vmem>>, %arg6: memref<32x192xbf16, #tpu.memory_space<vmem>>, %arg7: memref<8x96xf32, #tpu.memory_space<vmem>>, %arg8: memref<1x8x32xf32, #tpu.memory_space<vmem>>) attributes {dimension_semantics = [#tpu.dimension_semantics<parallel>], iteration_bounds = array<i64: 2>, scalar_prefetch = 0 : i64, scratch_operands = 0 : i64, tpu.core_type = #tpu.core_type<tc>, window_params = [{transform_indices = @transform_0, window_bounds = array<i64: 1, 8, 32>}, {transform_indices = @transform_1, window_bounds = array<i64: 1, 8, 32>}, {transform_indices = @transform_2, window_bounds = array<i64: 1, 8, 8>}, {pipeline_mode = #tpu.pipeline_mode<synchronous>, transform_indices = @transform_3, window_bounds = array<i64: 32, 192>}, {pipeline_mode = #tpu.pipeline_mode<synchronous>, transform_indices = @transform_4, window_bounds = array<i64: 8, 96>}, {pipeline_mode = #tpu.pipeline_mode<synchronous>, transform_indices = @transform_5, window_bounds = array<i64: 32, 192>}, {pipeline_mode = #tpu.pipeline_mode<synchronous>, transform_indices = @transform_6, window_bounds = array<i64: 8, 96>}, {transform_indices = @transform_7, window_bounds = array<i64: 1, 8, 32>}]} {
    %c0 = arith.constant 0 : index
    %c0_0 = arith.constant 0 : index
    %c0_1 = arith.constant 0 : index
    %0 = vector.load %arg1[%c0, %c0_0, %c0_1] : memref<1x8x32xf32, #tpu.memory_space<vmem>>, vector<1x8x32xf32>
    %1 = vector.shape_cast %0 : vector<1x8x32xf32> to vector<8x32xf32>
    %c0_2 = arith.constant 0 : index
    %c0_3 = arith.constant 0 : index
    %c0_4 = arith.constant 0 : index
    %2 = vector.load %arg2[%c0_2, %c0_3, %c0_4] : memref<1x8x32xf32, #tpu.memory_space<vmem>>, vector<1x8x32xf32>
    %3 = vector.shape_cast %2 : vector<1x8x32xf32> to vector<8x32xf32>
    %c0_5 = arith.constant 0 : index
    %c0_6 = arith.constant 0 : index
    %c0_7 = arith.constant 0 : index
    %4 = vector.load %arg3[%c0_5, %c0_6, %c0_7] : memref<1x8x8xf32, #tpu.memory_space<vmem>>, vector<1x8x8xf32>
    %5 = vector.shape_cast %4 : vector<1x8x8xf32> to vector<8x8xf32>
    %cst = arith.constant 0.000000e+00 : f32
    %6 = vector.broadcast %cst : f32 to vector<8x8xf32>
    %7 = arith.cmpf one, %5, %6 : vector<8x8xf32>
    %cst_8 = arith.constant 0.000000e+00 : f32
    %cst_9 = arith.constant -1.000000e+30 : f32
    %8 = vector.broadcast %cst_8 : f32 to vector<8x8xf32>
    %9 = vector.broadcast %cst_9 : f32 to vector<8x8xf32>
    %10 = arith.select %7, %8, %9 : vector<8x8xi1>, vector<8x8xf32>
    %11 = vector.shape_cast %10 : vector<8x8xf32> to vector<1x8x8xf32>
    %12 = vector.shape_cast %11 : vector<1x8x8xf32> to vector<1x8x8xf32>
    %13 = vector.broadcast %12 : vector<1x8x8xf32> to vector<4x8x8xf32>
    %c0_10 = arith.constant 0 : index
    %c0_11 = arith.constant 0 : index
    %14 = vector.load %arg4[%c0_10, %c0_11] : memref<32x192xbf16, #tpu.memory_space<vmem>>, vector<32x192xbf16>
    %c0_12 = arith.constant 0 : index
    %c0_13 = arith.constant 0 : index
    %15 = vector.load %arg5[%c0_12, %c0_13] : memref<8x96xf32, #tpu.memory_space<vmem>>, vector<8x96xf32>
    %16 = vector.extract_strided_slice %14 {offsets = [0, 0], sizes = [32, 96], strides = [1, 1]} : vector<32x192xbf16> to vector<32x96xbf16>
    %17 = vector.extract_strided_slice %14 {offsets = [0, 96], sizes = [32, 32], strides = [1, 1]} : vector<32x192xbf16> to vector<32x32xbf16>
    %18 = vector.extract_strided_slice %14 {offsets = [0, 128], sizes = [32, 32], strides = [1, 1]} : vector<32x192xbf16> to vector<32x32xbf16>
    %19 = vector.extract_strided_slice %14 {offsets = [0, 160], sizes = [32, 32], strides = [1, 1]} : vector<32x192xbf16> to vector<32x32xbf16>
    %20 = vector.extract_strided_slice %15 {offsets = [0, 0], sizes = [1, 96], strides = [1, 1]} : vector<8x96xf32> to vector<1x96xf32>
    %21 = vector.extract_strided_slice %15 {offsets = [1, 0], sizes = [1, 32], strides = [1, 1]} : vector<8x96xf32> to vector<1x32xf32>
    %22 = vector.extract_strided_slice %15 {offsets = [2, 0], sizes = [1, 32], strides = [1, 1]} : vector<8x96xf32> to vector<1x32xf32>
    %23 = vector.extract_strided_slice %15 {offsets = [3, 0], sizes = [1, 32], strides = [1, 1]} : vector<8x96xf32> to vector<1x32xf32>
    %24 = vector.extract_strided_slice %15 {offsets = [4, 0], sizes = [1, 32], strides = [1, 1]} : vector<8x96xf32> to vector<1x32xf32>
    %25 = vector.extract_strided_slice %15 {offsets = [5, 0], sizes = [1, 32], strides = [1, 1]} : vector<8x96xf32> to vector<1x32xf32>
    %26 = vector.extract_strided_slice %15 {offsets = [6, 0], sizes = [1, 32], strides = [1, 1]} : vector<8x96xf32> to vector<1x32xf32>
    %27 = vector.extract_strided_slice %15 {offsets = [7, 0], sizes = [1, 32], strides = [1, 1]} : vector<8x96xf32> to vector<1x32xf32>
    %c0_14 = arith.constant 0 : index
    %c0_15 = arith.constant 0 : index
    %28 = vector.load %arg6[%c0_14, %c0_15] : memref<32x192xbf16, #tpu.memory_space<vmem>>, vector<32x192xbf16>
    %c0_16 = arith.constant 0 : index
    %c0_17 = arith.constant 0 : index
    %29 = vector.load %arg7[%c0_16, %c0_17] : memref<8x96xf32, #tpu.memory_space<vmem>>, vector<8x96xf32>
    %30 = vector.extract_strided_slice %28 {offsets = [0, 0], sizes = [32, 32], strides = [1, 1]} : vector<32x192xbf16> to vector<32x32xbf16>
    %31 = vector.extract_strided_slice %28 {offsets = [0, 32], sizes = [32, 64], strides = [1, 1]} : vector<32x192xbf16> to vector<32x64xbf16>
    %32 = vector.extract_strided_slice %28 {offsets = [0, 96], sizes = [32, 32], strides = [1, 1]} : vector<32x192xbf16> to vector<32x32xbf16>
    %33 = vector.extract_strided_slice %28 {offsets = [0, 128], sizes = [32, 32], strides = [1, 1]} : vector<32x192xbf16> to vector<32x32xbf16>
    %34 = vector.extract_strided_slice %28 {offsets = [0, 160], sizes = [32, 32], strides = [1, 1]} : vector<32x192xbf16> to vector<32x32xbf16>
    %35 = vector.extract_strided_slice %29 {offsets = [0, 0], sizes = [1, 32], strides = [1, 1]} : vector<8x96xf32> to vector<1x32xf32>
    %36 = vector.extract_strided_slice %29 {offsets = [0, 32], sizes = [1, 64], strides = [1, 1]} : vector<8x96xf32> to vector<1x64xf32>
    %37 = vector.extract_strided_slice %29 {offsets = [1, 0], sizes = [1, 32], strides = [1, 1]} : vector<8x96xf32> to vector<1x32xf32>
    %38 = vector.extract_strided_slice %29 {offsets = [2, 0], sizes = [1, 32], strides = [1, 1]} : vector<8x96xf32> to vector<1x32xf32>
    %39 = vector.extract_strided_slice %29 {offsets = [3, 0], sizes = [1, 32], strides = [1, 1]} : vector<8x96xf32> to vector<1x32xf32>
    %40 = vector.extract_strided_slice %29 {offsets = [4, 0], sizes = [1, 32], strides = [1, 1]} : vector<8x96xf32> to vector<1x32xf32>
    %41 = vector.extract_strided_slice %29 {offsets = [5, 0], sizes = [1, 32], strides = [1, 1]} : vector<8x96xf32> to vector<1x32xf32>
    %42 = vector.extract_strided_slice %29 {offsets = [6, 0], sizes = [1, 32], strides = [1, 1]} : vector<8x96xf32> to vector<1x32xf32>
    %43 = vector.extract_strided_slice %29 {offsets = [7, 0], sizes = [1, 32], strides = [1, 1]} : vector<8x96xf32> to vector<1x32xf32>
    %44 = arith.truncf %1 : vector<8x32xf32> to vector<8x32xbf16>
    %cst_18 = arith.constant dense<0.000000e+00> : vector<8x96xf32>
    %45 = tpu.matmul %44, %16, %cst_18 {dimension_numbers = #tpu.dot_dimension_numbers<[1], [0], [0], [1], [0, 0, 1, 1], [], []>} : vector<8x32xbf16>, vector<32x96xbf16>, vector<8x96xf32> -> vector<8x96xf32>
    %46 = vector.broadcast %20 : vector<1x96xf32> to vector<8x96xf32>
    %47 = arith.addf %45, %46 : vector<8x96xf32>
    %48 = vector.extract_strided_slice %47 {offsets = [0, 0], sizes = [8, 32], strides = [1, 1]} : vector<8x96xf32> to vector<8x32xf32>
    %49 = vector.extract_strided_slice %47 {offsets = [0, 32], sizes = [8, 32], strides = [1, 1]} : vector<8x96xf32> to vector<8x32xf32>
    %50 = vector.extract_strided_slice %47 {offsets = [0, 64], sizes = [8, 32], strides = [1, 1]} : vector<8x96xf32> to vector<8x32xf32>
    %51 = arith.truncf %48 : vector<8x32xf32> to vector<8x32xbf16>
    %52 = vector.extract_strided_slice %51 {offsets = [0, 0], sizes = [8, 8], strides = [1, 1]} : vector<8x32xbf16> to vector<8x8xbf16>
    %53 = vector.extract_strided_slice %51 {offsets = [0, 8], sizes = [8, 8], strides = [1, 1]} : vector<8x32xbf16> to vector<8x8xbf16>
    %54 = vector.extract_strided_slice %51 {offsets = [0, 16], sizes = [8, 8], strides = [1, 1]} : vector<8x32xbf16> to vector<8x8xbf16>
    %55 = vector.extract_strided_slice %51 {offsets = [0, 24], sizes = [8, 8], strides = [1, 1]} : vector<8x32xbf16> to vector<8x8xbf16>
    %56 = vector.shape_cast %52 : vector<8x8xbf16> to vector<1x8x8xbf16>
    %57 = vector.shape_cast %53 : vector<8x8xbf16> to vector<1x8x8xbf16>
    %58 = vector.shape_cast %54 : vector<8x8xbf16> to vector<1x8x8xbf16>
    %59 = vector.shape_cast %55 : vector<8x8xbf16> to vector<1x8x8xbf16>
    %60 = tpu.concatenate %56, %57, %58, %59 in 0 : vector<1x8x8xbf16>, vector<1x8x8xbf16>, vector<1x8x8xbf16>, vector<1x8x8xbf16> -> vector<4x8x8xbf16>
    %61 = arith.truncf %49 : vector<8x32xf32> to vector<8x32xbf16>
    %62 = vector.extract_strided_slice %61 {offsets = [0, 0], sizes = [8, 8], strides = [1, 1]} : vector<8x32xbf16> to vector<8x8xbf16>
    %63 = vector.extract_strided_slice %61 {offsets = [0, 8], sizes = [8, 8], strides = [1, 1]} : vector<8x32xbf16> to vector<8x8xbf16>
    %64 = vector.extract_strided_slice %61 {offsets = [0, 16], sizes = [8, 8], strides = [1, 1]} : vector<8x32xbf16> to vector<8x8xbf16>
    %65 = vector.extract_strided_slice %61 {offsets = [0, 24], sizes = [8, 8], strides = [1, 1]} : vector<8x32xbf16> to vector<8x8xbf16>
    %66 = vector.shape_cast %62 : vector<8x8xbf16> to vector<1x8x8xbf16>
    %67 = vector.shape_cast %63 : vector<8x8xbf16> to vector<1x8x8xbf16>
    %68 = vector.shape_cast %64 : vector<8x8xbf16> to vector<1x8x8xbf16>
    %69 = vector.shape_cast %65 : vector<8x8xbf16> to vector<1x8x8xbf16>
    %70 = tpu.concatenate %66, %67, %68, %69 in 0 : vector<1x8x8xbf16>, vector<1x8x8xbf16>, vector<1x8x8xbf16>, vector<1x8x8xbf16> -> vector<4x8x8xbf16>
    %71 = arith.truncf %50 : vector<8x32xf32> to vector<8x32xbf16>
    %72 = vector.extract_strided_slice %71 {offsets = [0, 0], sizes = [8, 8], strides = [1, 1]} : vector<8x32xbf16> to vector<8x8xbf16>
    %73 = vector.extract_strided_slice %71 {offsets = [0, 8], sizes = [8, 8], strides = [1, 1]} : vector<8x32xbf16> to vector<8x8xbf16>
    %74 = vector.extract_strided_slice %71 {offsets = [0, 16], sizes = [8, 8], strides = [1, 1]} : vector<8x32xbf16> to vector<8x8xbf16>
    %75 = vector.extract_strided_slice %71 {offsets = [0, 24], sizes = [8, 8], strides = [1, 1]} : vector<8x32xbf16> to vector<8x8xbf16>
    %76 = vector.shape_cast %72 : vector<8x8xbf16> to vector<1x8x8xbf16>
    %77 = vector.shape_cast %73 : vector<8x8xbf16> to vector<1x8x8xbf16>
    %78 = vector.shape_cast %74 : vector<8x8xbf16> to vector<1x8x8xbf16>
    %79 = vector.shape_cast %75 : vector<8x8xbf16> to vector<1x8x8xbf16>
    %80 = tpu.concatenate %76, %77, %78, %79 in 0 : vector<1x8x8xbf16>, vector<1x8x8xbf16>, vector<1x8x8xbf16>, vector<1x8x8xbf16> -> vector<4x8x8xbf16>
    "tpu.trace_start"() <{level = 10 : i32, message = "hqd,hkd->hqk"}> : () -> ()
    %cst_19 = arith.constant dense<0.000000e+00> : vector<4x8x8xf32>
    %81 = tpu.matmul %60, %70, %cst_19 {dimension_numbers = #tpu.dot_dimension_numbers<[2], [2], [1], [1], [0, 0, 0, 1, 1, 1], [0], [0]>} : vector<4x8x8xbf16>, vector<4x8x8xbf16>, vector<4x8x8xf32> -> vector<4x8x8xf32>
    "tpu.trace_stop"() : () -> ()
    %82 = arith.addf %81, %13 : vector<4x8x8xf32>
    %cst_20 = arith.constant dense<0xFF800000> : vector<4x8xf32>
    %83 = vector.multi_reduction <maximumf>, %82, %cst_20 [2] : vector<4x8x8xf32> to vector<4x8xf32>
    %84 = vector.shape_cast %83 : vector<4x8xf32> to vector<4x8x1xf32>
    %85 = vector.broadcast %84 : vector<4x8x1xf32> to vector<4x8x8xf32>
    %86 = arith.subf %82, %85 : vector<4x8x8xf32>
    %87 = math.exp %86 : vector<4x8x8xf32>
    %cst_21 = arith.constant dense<0.000000e+00> : vector<4x8xf32>
    %88 = vector.multi_reduction <add>, %87, %cst_21 [2] : vector<4x8x8xf32> to vector<4x8xf32>
    %89 = vector.shape_cast %88 : vector<4x8xf32> to vector<4x8x1xf32>
    %90 = tpu.reciprocal %89 {approx = true} : vector<4x8x1xf32> -> vector<4x8x1xf32>
    %91 = vector.broadcast %90 : vector<4x8x1xf32> to vector<4x8x8xf32>
    %92 = arith.mulf %87, %91 : vector<4x8x8xf32>
    %93 = arith.truncf %92 : vector<4x8x8xf32> to vector<4x8x8xbf16>
    "tpu.trace_start"() <{level = 10 : i32, message = "hqk,hkd->hqd"}> : () -> ()
    %cst_22 = arith.constant dense<0.000000e+00> : vector<4x8x8xf32>
    %94 = tpu.matmul %93, %80, %cst_22 {dimension_numbers = #tpu.dot_dimension_numbers<[2], [1], [1], [2], [0, 0, 0, 1, 1, 2], [0], [0]>} : vector<4x8x8xbf16>, vector<4x8x8xbf16>, vector<4x8x8xf32> -> vector<4x8x8xf32>
    "tpu.trace_stop"() : () -> ()
    %95 = vector.extract_strided_slice %94 {offsets = [0, 0, 0], sizes = [1, 8, 8], strides = [1, 1, 1]} : vector<4x8x8xf32> to vector<1x8x8xf32>
    %96 = vector.shape_cast %95 : vector<1x8x8xf32> to vector<8x8xf32>
    %97 = vector.extract_strided_slice %94 {offsets = [1, 0, 0], sizes = [1, 8, 8], strides = [1, 1, 1]} : vector<4x8x8xf32> to vector<1x8x8xf32>
    %98 = vector.shape_cast %97 : vector<1x8x8xf32> to vector<8x8xf32>
    %99 = vector.extract_strided_slice %94 {offsets = [2, 0, 0], sizes = [1, 8, 8], strides = [1, 1, 1]} : vector<4x8x8xf32> to vector<1x8x8xf32>
    %100 = vector.shape_cast %99 : vector<1x8x8xf32> to vector<8x8xf32>
    %101 = vector.extract_strided_slice %94 {offsets = [3, 0, 0], sizes = [1, 8, 8], strides = [1, 1, 1]} : vector<4x8x8xf32> to vector<1x8x8xf32>
    %102 = vector.shape_cast %101 : vector<1x8x8xf32> to vector<8x8xf32>
    %103 = tpu.concatenate %96, %98, %100, %102 in 1 : vector<8x8xf32>, vector<8x8xf32>, vector<8x8xf32>, vector<8x8xf32> -> vector<8x32xf32>
    %104 = arith.truncf %103 : vector<8x32xf32> to vector<8x32xbf16>
    %cst_23 = arith.constant dense<0.000000e+00> : vector<8x32xf32>
    %105 = tpu.matmul %104, %17, %cst_23 {dimension_numbers = #tpu.dot_dimension_numbers<[1], [0], [0], [1], [0, 0, 1, 1], [], []>} : vector<8x32xbf16>, vector<32x32xbf16>, vector<8x32xf32> -> vector<8x32xf32>
    %106 = vector.broadcast %21 : vector<1x32xf32> to vector<8x32xf32>
    %107 = arith.addf %105, %106 : vector<8x32xf32>
    %108 = arith.addf %1, %107 : vector<8x32xf32>
    %cst_24 = arith.constant dense<0.000000e+00> : vector<8xf32>
    %109 = vector.multi_reduction <add>, %108, %cst_24 [1] : vector<8x32xf32> to vector<8xf32>
    %110 = vector.shape_cast %109 : vector<8xf32> to vector<8x1xf32>
    %cst_25 = arith.constant 3.200000e+01 : f32
    %111 = vector.broadcast %cst_25 : f32 to vector<8x1xf32>
    %112 = arith.divf %110, %111 : vector<8x1xf32>
    %113 = vector.broadcast %112 : vector<8x1xf32> to vector<8x32xf32>
    %114 = arith.subf %108, %113 : vector<8x32xf32>
    %115 = arith.mulf %114, %114 : vector<8x32xf32>
    %cst_26 = arith.constant dense<0.000000e+00> : vector<8xf32>
    %116 = vector.multi_reduction <add>, %115, %cst_26 [1] : vector<8x32xf32> to vector<8xf32>
    %117 = vector.shape_cast %116 : vector<8xf32> to vector<8x1xf32>
    %cst_27 = arith.constant 3.200000e+01 : f32
    %118 = vector.broadcast %cst_27 : f32 to vector<8x1xf32>
    %119 = arith.divf %117, %118 : vector<8x1xf32>
    %cst_28 = arith.constant 9.99999974E-6 : f32
    %120 = vector.broadcast %cst_28 : f32 to vector<8x1xf32>
    %121 = arith.addf %119, %120 : vector<8x1xf32>
    %122 = math.rsqrt %121 : vector<8x1xf32>
    %123 = vector.broadcast %122 : vector<8x1xf32> to vector<8x32xf32>
    %124 = arith.mulf %114, %123 : vector<8x32xf32>
    %125 = vector.broadcast %24 : vector<1x32xf32> to vector<8x32xf32>
    %126 = arith.mulf %124, %125 : vector<8x32xf32>
    %127 = vector.broadcast %25 : vector<1x32xf32> to vector<8x32xf32>
    %128 = arith.addf %126, %127 : vector<8x32xf32>
    %129 = arith.truncf %128 : vector<8x32xf32> to vector<8x32xbf16>
    %cst_29 = arith.constant dense<0.000000e+00> : vector<8x32xf32>
    %130 = tpu.matmul %129, %18, %cst_29 {dimension_numbers = #tpu.dot_dimension_numbers<[1], [0], [0], [1], [0, 0, 1, 1], [], []>} : vector<8x32xbf16>, vector<32x32xbf16>, vector<8x32xf32> -> vector<8x32xf32>
    %131 = vector.broadcast %22 : vector<1x32xf32> to vector<8x32xf32>
    %132 = arith.addf %130, %131 : vector<8x32xf32>
    %cst_30 = arith.constant 0.000000e+00 : f32
    %133 = vector.broadcast %cst_30 : f32 to vector<8x32xf32>
    %134 = arith.maximumf %132, %133 : vector<8x32xf32>
    %135 = arith.truncf %134 : vector<8x32xf32> to vector<8x32xbf16>
    %cst_31 = arith.constant dense<0.000000e+00> : vector<8x32xf32>
    %136 = tpu.matmul %135, %19, %cst_31 {dimension_numbers = #tpu.dot_dimension_numbers<[1], [0], [0], [1], [0, 0, 1, 1], [], []>} : vector<8x32xbf16>, vector<32x32xbf16>, vector<8x32xf32> -> vector<8x32xf32>
    %137 = vector.broadcast %23 : vector<1x32xf32> to vector<8x32xf32>
    %138 = arith.addf %136, %137 : vector<8x32xf32>
    %139 = arith.addf %128, %138 : vector<8x32xf32>
    %cst_32 = arith.constant dense<0.000000e+00> : vector<8xf32>
    %140 = vector.multi_reduction <add>, %139, %cst_32 [1] : vector<8x32xf32> to vector<8xf32>
    %141 = vector.shape_cast %140 : vector<8xf32> to vector<8x1xf32>
    %cst_33 = arith.constant 3.200000e+01 : f32
    %142 = vector.broadcast %cst_33 : f32 to vector<8x1xf32>
    %143 = arith.divf %141, %142 : vector<8x1xf32>
    %144 = vector.broadcast %143 : vector<8x1xf32> to vector<8x32xf32>
    %145 = arith.subf %139, %144 : vector<8x32xf32>
    %146 = arith.mulf %145, %145 : vector<8x32xf32>
    %cst_34 = arith.constant dense<0.000000e+00> : vector<8xf32>
    %147 = vector.multi_reduction <add>, %146, %cst_34 [1] : vector<8x32xf32> to vector<8xf32>
    %148 = vector.shape_cast %147 : vector<8xf32> to vector<8x1xf32>
    %cst_35 = arith.constant 3.200000e+01 : f32
    %149 = vector.broadcast %cst_35 : f32 to vector<8x1xf32>
    %150 = arith.divf %148, %149 : vector<8x1xf32>
    %cst_36 = arith.constant 9.99999974E-6 : f32
    %151 = vector.broadcast %cst_36 : f32 to vector<8x1xf32>
    %152 = arith.addf %150, %151 : vector<8x1xf32>
    %153 = math.rsqrt %152 : vector<8x1xf32>
    %154 = vector.broadcast %153 : vector<8x1xf32> to vector<8x32xf32>
    %155 = arith.mulf %145, %154 : vector<8x32xf32>
    %156 = vector.broadcast %26 : vector<1x32xf32> to vector<8x32xf32>
    %157 = arith.mulf %155, %156 : vector<8x32xf32>
    %158 = vector.broadcast %27 : vector<1x32xf32> to vector<8x32xf32>
    %159 = arith.addf %157, %158 : vector<8x32xf32>
    %160 = arith.truncf %3 : vector<8x32xf32> to vector<8x32xbf16>
    %cst_37 = arith.constant dense<0.000000e+00> : vector<8x32xf32>
    %161 = tpu.matmul %160, %30, %cst_37 {dimension_numbers = #tpu.dot_dimension_numbers<[1], [0], [0], [1], [0, 0, 1, 1], [], []>} : vector<8x32xbf16>, vector<32x32xbf16>, vector<8x32xf32> -> vector<8x32xf32>
    %162 = vector.broadcast %35 : vector<1x32xf32> to vector<8x32xf32>
    %163 = arith.addf %161, %162 : vector<8x32xf32>
    %164 = arith.truncf %159 : vector<8x32xf32> to vector<8x32xbf16>
    %cst_38 = arith.constant dense<0.000000e+00> : vector<8x64xf32>
    %165 = tpu.matmul %164, %31, %cst_38 {dimension_numbers = #tpu.dot_dimension_numbers<[1], [0], [0], [1], [0, 0, 1, 1], [], []>} : vector<8x32xbf16>, vector<32x64xbf16>, vector<8x64xf32> -> vector<8x64xf32>
    %166 = vector.broadcast %36 : vector<1x64xf32> to vector<8x64xf32>
    %167 = arith.addf %165, %166 : vector<8x64xf32>
    %168 = vector.extract_strided_slice %167 {offsets = [0, 0], sizes = [8, 32], strides = [1, 1]} : vector<8x64xf32> to vector<8x32xf32>
    %169 = vector.extract_strided_slice %167 {offsets = [0, 32], sizes = [8, 32], strides = [1, 1]} : vector<8x64xf32> to vector<8x32xf32>
    %170 = arith.truncf %163 : vector<8x32xf32> to vector<8x32xbf16>
    %171 = vector.extract_strided_slice %170 {offsets = [0, 0], sizes = [8, 8], strides = [1, 1]} : vector<8x32xbf16> to vector<8x8xbf16>
    %172 = vector.extract_strided_slice %170 {offsets = [0, 8], sizes = [8, 8], strides = [1, 1]} : vector<8x32xbf16> to vector<8x8xbf16>
    %173 = vector.extract_strided_slice %170 {offsets = [0, 16], sizes = [8, 8], strides = [1, 1]} : vector<8x32xbf16> to vector<8x8xbf16>
    %174 = vector.extract_strided_slice %170 {offsets = [0, 24], sizes = [8, 8], strides = [1, 1]} : vector<8x32xbf16> to vector<8x8xbf16>
    %175 = vector.shape_cast %171 : vector<8x8xbf16> to vector<1x8x8xbf16>
    %176 = vector.shape_cast %172 : vector<8x8xbf16> to vector<1x8x8xbf16>
    %177 = vector.shape_cast %173 : vector<8x8xbf16> to vector<1x8x8xbf16>
    %178 = vector.shape_cast %174 : vector<8x8xbf16> to vector<1x8x8xbf16>
    %179 = tpu.concatenate %175, %176, %177, %178 in 0 : vector<1x8x8xbf16>, vector<1x8x8xbf16>, vector<1x8x8xbf16>, vector<1x8x8xbf16> -> vector<4x8x8xbf16>
    %180 = arith.truncf %168 : vector<8x32xf32> to vector<8x32xbf16>
    %181 = vector.extract_strided_slice %180 {offsets = [0, 0], sizes = [8, 8], strides = [1, 1]} : vector<8x32xbf16> to vector<8x8xbf16>
    %182 = vector.extract_strided_slice %180 {offsets = [0, 8], sizes = [8, 8], strides = [1, 1]} : vector<8x32xbf16> to vector<8x8xbf16>
    %183 = vector.extract_strided_slice %180 {offsets = [0, 16], sizes = [8, 8], strides = [1, 1]} : vector<8x32xbf16> to vector<8x8xbf16>
    %184 = vector.extract_strided_slice %180 {offsets = [0, 24], sizes = [8, 8], strides = [1, 1]} : vector<8x32xbf16> to vector<8x8xbf16>
    %185 = vector.shape_cast %181 : vector<8x8xbf16> to vector<1x8x8xbf16>
    %186 = vector.shape_cast %182 : vector<8x8xbf16> to vector<1x8x8xbf16>
    %187 = vector.shape_cast %183 : vector<8x8xbf16> to vector<1x8x8xbf16>
    %188 = vector.shape_cast %184 : vector<8x8xbf16> to vector<1x8x8xbf16>
    %189 = tpu.concatenate %185, %186, %187, %188 in 0 : vector<1x8x8xbf16>, vector<1x8x8xbf16>, vector<1x8x8xbf16>, vector<1x8x8xbf16> -> vector<4x8x8xbf16>
    %190 = arith.truncf %169 : vector<8x32xf32> to vector<8x32xbf16>
    %191 = vector.extract_strided_slice %190 {offsets = [0, 0], sizes = [8, 8], strides = [1, 1]} : vector<8x32xbf16> to vector<8x8xbf16>
    %192 = vector.extract_strided_slice %190 {offsets = [0, 8], sizes = [8, 8], strides = [1, 1]} : vector<8x32xbf16> to vector<8x8xbf16>
    %193 = vector.extract_strided_slice %190 {offsets = [0, 16], sizes = [8, 8], strides = [1, 1]} : vector<8x32xbf16> to vector<8x8xbf16>
    %194 = vector.extract_strided_slice %190 {offsets = [0, 24], sizes = [8, 8], strides = [1, 1]} : vector<8x32xbf16> to vector<8x8xbf16>
    %195 = vector.shape_cast %191 : vector<8x8xbf16> to vector<1x8x8xbf16>
    %196 = vector.shape_cast %192 : vector<8x8xbf16> to vector<1x8x8xbf16>
    %197 = vector.shape_cast %193 : vector<8x8xbf16> to vector<1x8x8xbf16>
    %198 = vector.shape_cast %194 : vector<8x8xbf16> to vector<1x8x8xbf16>
    %199 = tpu.concatenate %195, %196, %197, %198 in 0 : vector<1x8x8xbf16>, vector<1x8x8xbf16>, vector<1x8x8xbf16>, vector<1x8x8xbf16> -> vector<4x8x8xbf16>
    "tpu.trace_start"() <{level = 10 : i32, message = "hqd,hkd->hqk"}> : () -> ()
    %cst_39 = arith.constant dense<0.000000e+00> : vector<4x8x8xf32>
    %200 = tpu.matmul %179, %189, %cst_39 {dimension_numbers = #tpu.dot_dimension_numbers<[2], [2], [1], [1], [0, 0, 0, 1, 1, 1], [0], [0]>} : vector<4x8x8xbf16>, vector<4x8x8xbf16>, vector<4x8x8xf32> -> vector<4x8x8xf32>
    "tpu.trace_stop"() : () -> ()
    %cst_40 = arith.constant dense<0xFF800000> : vector<4x8xf32>
    %201 = vector.multi_reduction <maximumf>, %200, %cst_40 [2] : vector<4x8x8xf32> to vector<4x8xf32>
    %202 = vector.shape_cast %201 : vector<4x8xf32> to vector<4x8x1xf32>
    %203 = vector.broadcast %202 : vector<4x8x1xf32> to vector<4x8x8xf32>
    %204 = arith.subf %200, %203 : vector<4x8x8xf32>
    %205 = math.exp %204 : vector<4x8x8xf32>
    %cst_41 = arith.constant dense<0.000000e+00> : vector<4x8xf32>
    %206 = vector.multi_reduction <add>, %205, %cst_41 [2] : vector<4x8x8xf32> to vector<4x8xf32>
    %207 = vector.shape_cast %206 : vector<4x8xf32> to vector<4x8x1xf32>
    %208 = tpu.reciprocal %207 {approx = true} : vector<4x8x1xf32> -> vector<4x8x1xf32>
    %209 = vector.broadcast %208 : vector<4x8x1xf32> to vector<4x8x8xf32>
    %210 = arith.mulf %205, %209 : vector<4x8x8xf32>
    %211 = arith.truncf %210 : vector<4x8x8xf32> to vector<4x8x8xbf16>
    "tpu.trace_start"() <{level = 10 : i32, message = "hqk,hkd->hqd"}> : () -> ()
    %cst_42 = arith.constant dense<0.000000e+00> : vector<4x8x8xf32>
    %212 = tpu.matmul %211, %199, %cst_42 {dimension_numbers = #tpu.dot_dimension_numbers<[2], [1], [1], [2], [0, 0, 0, 1, 1, 2], [0], [0]>} : vector<4x8x8xbf16>, vector<4x8x8xbf16>, vector<4x8x8xf32> -> vector<4x8x8xf32>
    "tpu.trace_stop"() : () -> ()
    %213 = vector.extract_strided_slice %212 {offsets = [0, 0, 0], sizes = [1, 8, 8], strides = [1, 1, 1]} : vector<4x8x8xf32> to vector<1x8x8xf32>
    %214 = vector.shape_cast %213 : vector<1x8x8xf32> to vector<8x8xf32>
    %215 = vector.extract_strided_slice %212 {offsets = [1, 0, 0], sizes = [1, 8, 8], strides = [1, 1, 1]} : vector<4x8x8xf32> to vector<1x8x8xf32>
    %216 = vector.shape_cast %215 : vector<1x8x8xf32> to vector<8x8xf32>
    %217 = vector.extract_strided_slice %212 {offsets = [2, 0, 0], sizes = [1, 8, 8], strides = [1, 1, 1]} : vector<4x8x8xf32> to vector<1x8x8xf32>
    %218 = vector.shape_cast %217 : vector<1x8x8xf32> to vector<8x8xf32>
    %219 = vector.extract_strided_slice %212 {offsets = [3, 0, 0], sizes = [1, 8, 8], strides = [1, 1, 1]} : vector<4x8x8xf32> to vector<1x8x8xf32>
    %220 = vector.shape_cast %219 : vector<1x8x8xf32> to vector<8x8xf32>
    %221 = tpu.concatenate %214, %216, %218, %220 in 1 : vector<8x8xf32>, vector<8x8xf32>, vector<8x8xf32>, vector<8x8xf32> -> vector<8x32xf32>
    %222 = arith.truncf %221 : vector<8x32xf32> to vector<8x32xbf16>
    %cst_43 = arith.constant dense<0.000000e+00> : vector<8x32xf32>
    %223 = tpu.matmul %222, %32, %cst_43 {dimension_numbers = #tpu.dot_dimension_numbers<[1], [0], [0], [1], [0, 0, 1, 1], [], []>} : vector<8x32xbf16>, vector<32x32xbf16>, vector<8x32xf32> -> vector<8x32xf32>
    %224 = vector.broadcast %37 : vector<1x32xf32> to vector<8x32xf32>
    %225 = arith.addf %223, %224 : vector<8x32xf32>
    %226 = arith.addf %3, %225 : vector<8x32xf32>
    %cst_44 = arith.constant dense<0.000000e+00> : vector<8xf32>
    %227 = vector.multi_reduction <add>, %226, %cst_44 [1] : vector<8x32xf32> to vector<8xf32>
    %228 = vector.shape_cast %227 : vector<8xf32> to vector<8x1xf32>
    %cst_45 = arith.constant 3.200000e+01 : f32
    %229 = vector.broadcast %cst_45 : f32 to vector<8x1xf32>
    %230 = arith.divf %228, %229 : vector<8x1xf32>
    %231 = vector.broadcast %230 : vector<8x1xf32> to vector<8x32xf32>
    %232 = arith.subf %226, %231 : vector<8x32xf32>
    %233 = arith.mulf %232, %232 : vector<8x32xf32>
    %cst_46 = arith.constant dense<0.000000e+00> : vector<8xf32>
    %234 = vector.multi_reduction <add>, %233, %cst_46 [1] : vector<8x32xf32> to vector<8xf32>
    %235 = vector.shape_cast %234 : vector<8xf32> to vector<8x1xf32>
    %cst_47 = arith.constant 3.200000e+01 : f32
    %236 = vector.broadcast %cst_47 : f32 to vector<8x1xf32>
    %237 = arith.divf %235, %236 : vector<8x1xf32>
    %cst_48 = arith.constant 9.99999974E-6 : f32
    %238 = vector.broadcast %cst_48 : f32 to vector<8x1xf32>
    %239 = arith.addf %237, %238 : vector<8x1xf32>
    %240 = math.rsqrt %239 : vector<8x1xf32>
    %241 = vector.broadcast %240 : vector<8x1xf32> to vector<8x32xf32>
    %242 = arith.mulf %232, %241 : vector<8x32xf32>
    %243 = vector.broadcast %40 : vector<1x32xf32> to vector<8x32xf32>
    %244 = arith.mulf %242, %243 : vector<8x32xf32>
    %245 = vector.broadcast %41 : vector<1x32xf32> to vector<8x32xf32>
    %246 = arith.addf %244, %245 : vector<8x32xf32>
    %247 = arith.truncf %246 : vector<8x32xf32> to vector<8x32xbf16>
    %cst_49 = arith.constant dense<0.000000e+00> : vector<8x32xf32>
    %248 = tpu.matmul %247, %33, %cst_49 {dimension_numbers = #tpu.dot_dimension_numbers<[1], [0], [0], [1], [0, 0, 1, 1], [], []>} : vector<8x32xbf16>, vector<32x32xbf16>, vector<8x32xf32> -> vector<8x32xf32>
    %249 = vector.broadcast %38 : vector<1x32xf32> to vector<8x32xf32>
    %250 = arith.addf %248, %249 : vector<8x32xf32>
    %cst_50 = arith.constant 0.000000e+00 : f32
    %251 = vector.broadcast %cst_50 : f32 to vector<8x32xf32>
    %252 = arith.maximumf %250, %251 : vector<8x32xf32>
    %253 = arith.truncf %252 : vector<8x32xf32> to vector<8x32xbf16>
    %cst_51 = arith.constant dense<0.000000e+00> : vector<8x32xf32>
    %254 = tpu.matmul %253, %34, %cst_51 {dimension_numbers = #tpu.dot_dimension_numbers<[1], [0], [0], [1], [0, 0, 1, 1], [], []>} : vector<8x32xbf16>, vector<32x32xbf16>, vector<8x32xf32> -> vector<8x32xf32>
    %255 = vector.broadcast %39 : vector<1x32xf32> to vector<8x32xf32>
    %256 = arith.addf %254, %255 : vector<8x32xf32>
    %257 = arith.addf %246, %256 : vector<8x32xf32>
    %cst_52 = arith.constant dense<0.000000e+00> : vector<8xf32>
    %258 = vector.multi_reduction <add>, %257, %cst_52 [1] : vector<8x32xf32> to vector<8xf32>
    %259 = vector.shape_cast %258 : vector<8xf32> to vector<8x1xf32>
    %cst_53 = arith.constant 3.200000e+01 : f32
    %260 = vector.broadcast %cst_53 : f32 to vector<8x1xf32>
    %261 = arith.divf %259, %260 : vector<8x1xf32>
    %262 = vector.broadcast %261 : vector<8x1xf32> to vector<8x32xf32>
    %263 = arith.subf %257, %262 : vector<8x32xf32>
    %264 = arith.mulf %263, %263 : vector<8x32xf32>
    %cst_54 = arith.constant dense<0.000000e+00> : vector<8xf32>
    %265 = vector.multi_reduction <add>, %264, %cst_54 [1] : vector<8x32xf32> to vector<8xf32>
    %266 = vector.shape_cast %265 : vector<8xf32> to vector<8x1xf32>
    %cst_55 = arith.constant 3.200000e+01 : f32
    %267 = vector.broadcast %cst_55 : f32 to vector<8x1xf32>
    %268 = arith.divf %266, %267 : vector<8x1xf32>
    %cst_56 = arith.constant 9.99999974E-6 : f32
    %269 = vector.broadcast %cst_56 : f32 to vector<8x1xf32>
    %270 = arith.addf %268, %269 : vector<8x1xf32>
    %271 = math.rsqrt %270 : vector<8x1xf32>
    %272 = vector.broadcast %271 : vector<8x1xf32> to vector<8x32xf32>
    %273 = arith.mulf %263, %272 : vector<8x32xf32>
    %274 = vector.broadcast %42 : vector<1x32xf32> to vector<8x32xf32>
    %275 = arith.mulf %273, %274 : vector<8x32xf32>
    %276 = vector.broadcast %43 : vector<1x32xf32> to vector<8x32xf32>
    %277 = arith.addf %275, %276 : vector<8x32xf32>
    %278 = arith.truncf %159 : vector<8x32xf32> to vector<8x32xbf16>
    %cst_57 = arith.constant dense<0.000000e+00> : vector<8x96xf32>
    %279 = tpu.matmul %278, %16, %cst_57 {dimension_numbers = #tpu.dot_dimension_numbers<[1], [0], [0], [1], [0, 0, 1, 1], [], []>} : vector<8x32xbf16>, vector<32x96xbf16>, vector<8x96xf32> -> vector<8x96xf32>
    %280 = vector.broadcast %20 : vector<1x96xf32> to vector<8x96xf32>
    %281 = arith.addf %279, %280 : vector<8x96xf32>
    %282 = vector.extract_strided_slice %281 {offsets = [0, 0], sizes = [8, 32], strides = [1, 1]} : vector<8x96xf32> to vector<8x32xf32>
    %283 = vector.extract_strided_slice %281 {offsets = [0, 32], sizes = [8, 32], strides = [1, 1]} : vector<8x96xf32> to vector<8x32xf32>
    %284 = vector.extract_strided_slice %281 {offsets = [0, 64], sizes = [8, 32], strides = [1, 1]} : vector<8x96xf32> to vector<8x32xf32>
    %285 = arith.truncf %282 : vector<8x32xf32> to vector<8x32xbf16>
    %286 = vector.extract_strided_slice %285 {offsets = [0, 0], sizes = [8, 8], strides = [1, 1]} : vector<8x32xbf16> to vector<8x8xbf16>
    %287 = vector.extract_strided_slice %285 {offsets = [0, 8], sizes = [8, 8], strides = [1, 1]} : vector<8x32xbf16> to vector<8x8xbf16>
    %288 = vector.extract_strided_slice %285 {offsets = [0, 16], sizes = [8, 8], strides = [1, 1]} : vector<8x32xbf16> to vector<8x8xbf16>
    %289 = vector.extract_strided_slice %285 {offsets = [0, 24], sizes = [8, 8], strides = [1, 1]} : vector<8x32xbf16> to vector<8x8xbf16>
    %290 = vector.shape_cast %286 : vector<8x8xbf16> to vector<1x8x8xbf16>
    %291 = vector.shape_cast %287 : vector<8x8xbf16> to vector<1x8x8xbf16>
    %292 = vector.shape_cast %288 : vector<8x8xbf16> to vector<1x8x8xbf16>
    %293 = vector.shape_cast %289 : vector<8x8xbf16> to vector<1x8x8xbf16>
    %294 = tpu.concatenate %290, %291, %292, %293 in 0 : vector<1x8x8xbf16>, vector<1x8x8xbf16>, vector<1x8x8xbf16>, vector<1x8x8xbf16> -> vector<4x8x8xbf16>
    %295 = arith.truncf %283 : vector<8x32xf32> to vector<8x32xbf16>
    %296 = vector.extract_strided_slice %295 {offsets = [0, 0], sizes = [8, 8], strides = [1, 1]} : vector<8x32xbf16> to vector<8x8xbf16>
    %297 = vector.extract_strided_slice %295 {offsets = [0, 8], sizes = [8, 8], strides = [1, 1]} : vector<8x32xbf16> to vector<8x8xbf16>
    %298 = vector.extract_strided_slice %295 {offsets = [0, 16], sizes = [8, 8], strides = [1, 1]} : vector<8x32xbf16> to vector<8x8xbf16>
    %299 = vector.extract_strided_slice %295 {offsets = [0, 24], sizes = [8, 8], strides = [1, 1]} : vector<8x32xbf16> to vector<8x8xbf16>
    %300 = vector.shape_cast %296 : vector<8x8xbf16> to vector<1x8x8xbf16>
    %301 = vector.shape_cast %297 : vector<8x8xbf16> to vector<1x8x8xbf16>
    %302 = vector.shape_cast %298 : vector<8x8xbf16> to vector<1x8x8xbf16>
    %303 = vector.shape_cast %299 : vector<8x8xbf16> to vector<1x8x8xbf16>
    %304 = tpu.concatenate %300, %301, %302, %303 in 0 : vector<1x8x8xbf16>, vector<1x8x8xbf16>, vector<1x8x8xbf16>, vector<1x8x8xbf16> -> vector<4x8x8xbf16>
    %305 = arith.truncf %284 : vector<8x32xf32> to vector<8x32xbf16>
    %306 = vector.extract_strided_slice %305 {offsets = [0, 0], sizes = [8, 8], strides = [1, 1]} : vector<8x32xbf16> to vector<8x8xbf16>
    %307 = vector.extract_strided_slice %305 {offsets = [0, 8], sizes = [8, 8], strides = [1, 1]} : vector<8x32xbf16> to vector<8x8xbf16>
    %308 = vector.extract_strided_slice %305 {offsets = [0, 16], sizes = [8, 8], strides = [1, 1]} : vector<8x32xbf16> to vector<8x8xbf16>
    %309 = vector.extract_strided_slice %305 {offsets = [0, 24], sizes = [8, 8], strides = [1, 1]} : vector<8x32xbf16> to vector<8x8xbf16>
    %310 = vector.shape_cast %306 : vector<8x8xbf16> to vector<1x8x8xbf16>
    %311 = vector.shape_cast %307 : vector<8x8xbf16> to vector<1x8x8xbf16>
    %312 = vector.shape_cast %308 : vector<8x8xbf16> to vector<1x8x8xbf16>
    %313 = vector.shape_cast %309 : vector<8x8xbf16> to vector<1x8x8xbf16>
    %314 = tpu.concatenate %310, %311, %312, %313 in 0 : vector<1x8x8xbf16>, vector<1x8x8xbf16>, vector<1x8x8xbf16>, vector<1x8x8xbf16> -> vector<4x8x8xbf16>
    "tpu.trace_start"() <{level = 10 : i32, message = "hqd,hkd->hqk"}> : () -> ()
    %cst_58 = arith.constant dense<0.000000e+00> : vector<4x8x8xf32>
    %315 = tpu.matmul %294, %304, %cst_58 {dimension_numbers = #tpu.dot_dimension_numbers<[2], [2], [1], [1], [0, 0, 0, 1, 1, 1], [0], [0]>} : vector<4x8x8xbf16>, vector<4x8x8xbf16>, vector<4x8x8xf32> -> vector<4x8x8xf32>
    "tpu.trace_stop"() : () -> ()
    %316 = arith.addf %315, %13 : vector<4x8x8xf32>
    %cst_59 = arith.constant dense<0xFF800000> : vector<4x8xf32>
    %317 = vector.multi_reduction <maximumf>, %316, %cst_59 [2] : vector<4x8x8xf32> to vector<4x8xf32>
    %318 = vector.shape_cast %317 : vector<4x8xf32> to vector<4x8x1xf32>
    %319 = vector.broadcast %318 : vector<4x8x1xf32> to vector<4x8x8xf32>
    %320 = arith.subf %316, %319 : vector<4x8x8xf32>
    %321 = math.exp %320 : vector<4x8x8xf32>
    %cst_60 = arith.constant dense<0.000000e+00> : vector<4x8xf32>
    %322 = vector.multi_reduction <add>, %321, %cst_60 [2] : vector<4x8x8xf32> to vector<4x8xf32>
    %323 = vector.shape_cast %322 : vector<4x8xf32> to vector<4x8x1xf32>
    %324 = tpu.reciprocal %323 {approx = true} : vector<4x8x1xf32> -> vector<4x8x1xf32>
    %325 = vector.broadcast %324 : vector<4x8x1xf32> to vector<4x8x8xf32>
    %326 = arith.mulf %321, %325 : vector<4x8x8xf32>
    %327 = arith.truncf %326 : vector<4x8x8xf32> to vector<4x8x8xbf16>
    "tpu.trace_start"() <{level = 10 : i32, message = "hqk,hkd->hqd"}> : () -> ()
    %cst_61 = arith.constant dense<0.000000e+00> : vector<4x8x8xf32>
    %328 = tpu.matmul %327, %314, %cst_61 {dimension_numbers = #tpu.dot_dimension_numbers<[2], [1], [1], [2], [0, 0, 0, 1, 1, 2], [0], [0]>} : vector<4x8x8xbf16>, vector<4x8x8xbf16>, vector<4x8x8xf32> -> vector<4x8x8xf32>
    "tpu.trace_stop"() : () -> ()
    %329 = vector.extract_strided_slice %328 {offsets = [0, 0, 0], sizes = [1, 8, 8], strides = [1, 1, 1]} : vector<4x8x8xf32> to vector<1x8x8xf32>
    %330 = vector.shape_cast %329 : vector<1x8x8xf32> to vector<8x8xf32>
    %331 = vector.extract_strided_slice %328 {offsets = [1, 0, 0], sizes = [1, 8, 8], strides = [1, 1, 1]} : vector<4x8x8xf32> to vector<1x8x8xf32>
    %332 = vector.shape_cast %331 : vector<1x8x8xf32> to vector<8x8xf32>
    %333 = vector.extract_strided_slice %328 {offsets = [2, 0, 0], sizes = [1, 8, 8], strides = [1, 1, 1]} : vector<4x8x8xf32> to vector<1x8x8xf32>
    %334 = vector.shape_cast %333 : vector<1x8x8xf32> to vector<8x8xf32>
    %335 = vector.extract_strided_slice %328 {offsets = [3, 0, 0], sizes = [1, 8, 8], strides = [1, 1, 1]} : vector<4x8x8xf32> to vector<1x8x8xf32>
    %336 = vector.shape_cast %335 : vector<1x8x8xf32> to vector<8x8xf32>
    %337 = tpu.concatenate %330, %332, %334, %336 in 1 : vector<8x8xf32>, vector<8x8xf32>, vector<8x8xf32>, vector<8x8xf32> -> vector<8x32xf32>
    %338 = arith.truncf %337 : vector<8x32xf32> to vector<8x32xbf16>
    %cst_62 = arith.constant dense<0.000000e+00> : vector<8x32xf32>
    %339 = tpu.matmul %338, %17, %cst_62 {dimension_numbers = #tpu.dot_dimension_numbers<[1], [0], [0], [1], [0, 0, 1, 1], [], []>} : vector<8x32xbf16>, vector<32x32xbf16>, vector<8x32xf32> -> vector<8x32xf32>
    %340 = vector.broadcast %21 : vector<1x32xf32> to vector<8x32xf32>
    %341 = arith.addf %339, %340 : vector<8x32xf32>
    %342 = arith.addf %159, %341 : vector<8x32xf32>
    %cst_63 = arith.constant dense<0.000000e+00> : vector<8xf32>
    %343 = vector.multi_reduction <add>, %342, %cst_63 [1] : vector<8x32xf32> to vector<8xf32>
    %344 = vector.shape_cast %343 : vector<8xf32> to vector<8x1xf32>
    %cst_64 = arith.constant 3.200000e+01 : f32
    %345 = vector.broadcast %cst_64 : f32 to vector<8x1xf32>
    %346 = arith.divf %344, %345 : vector<8x1xf32>
    %347 = vector.broadcast %346 : vector<8x1xf32> to vector<8x32xf32>
    %348 = arith.subf %342, %347 : vector<8x32xf32>
    %349 = arith.mulf %348, %348 : vector<8x32xf32>
    %cst_65 = arith.constant dense<0.000000e+00> : vector<8xf32>
    %350 = vector.multi_reduction <add>, %349, %cst_65 [1] : vector<8x32xf32> to vector<8xf32>
    %351 = vector.shape_cast %350 : vector<8xf32> to vector<8x1xf32>
    %cst_66 = arith.constant 3.200000e+01 : f32
    %352 = vector.broadcast %cst_66 : f32 to vector<8x1xf32>
    %353 = arith.divf %351, %352 : vector<8x1xf32>
    %cst_67 = arith.constant 9.99999974E-6 : f32
    %354 = vector.broadcast %cst_67 : f32 to vector<8x1xf32>
    %355 = arith.addf %353, %354 : vector<8x1xf32>
    %356 = math.rsqrt %355 : vector<8x1xf32>
    %357 = vector.broadcast %356 : vector<8x1xf32> to vector<8x32xf32>
    %358 = arith.mulf %348, %357 : vector<8x32xf32>
    %359 = vector.broadcast %24 : vector<1x32xf32> to vector<8x32xf32>
    %360 = arith.mulf %358, %359 : vector<8x32xf32>
    %361 = vector.broadcast %25 : vector<1x32xf32> to vector<8x32xf32>
    %362 = arith.addf %360, %361 : vector<8x32xf32>
    %363 = arith.truncf %362 : vector<8x32xf32> to vector<8x32xbf16>
    %cst_68 = arith.constant dense<0.000000e+00> : vector<8x32xf32>
    %364 = tpu.matmul %363, %18, %cst_68 {dimension_numbers = #tpu.dot_dimension_numbers<[1], [0], [0], [1], [0, 0, 1, 1], [], []>} : vector<8x32xbf16>, vector<32x32xbf16>, vector<8x32xf32> -> vector<8x32xf32>
    %365 = vector.broadcast %22 : vector<1x32xf32> to vector<8x32xf32>
    %366 = arith.addf %364, %365 : vector<8x32xf32>
    %cst_69 = arith.constant 0.000000e+00 : f32
    %367 = vector.broadcast %cst_69 : f32 to vector<8x32xf32>
    %368 = arith.maximumf %366, %367 : vector<8x32xf32>
    %369 = arith.truncf %368 : vector<8x32xf32> to vector<8x32xbf16>
    %cst_70 = arith.constant dense<0.000000e+00> : vector<8x32xf32>
    %370 = tpu.matmul %369, %19, %cst_70 {dimension_numbers = #tpu.dot_dimension_numbers<[1], [0], [0], [1], [0, 0, 1, 1], [], []>} : vector<8x32xbf16>, vector<32x32xbf16>, vector<8x32xf32> -> vector<8x32xf32>
    %371 = vector.broadcast %23 : vector<1x32xf32> to vector<8x32xf32>
    %372 = arith.addf %370, %371 : vector<8x32xf32>
    %373 = arith.addf %362, %372 : vector<8x32xf32>
    %cst_71 = arith.constant dense<0.000000e+00> : vector<8xf32>
    %374 = vector.multi_reduction <add>, %373, %cst_71 [1] : vector<8x32xf32> to vector<8xf32>
    %375 = vector.shape_cast %374 : vector<8xf32> to vector<8x1xf32>
    %cst_72 = arith.constant 3.200000e+01 : f32
    %376 = vector.broadcast %cst_72 : f32 to vector<8x1xf32>
    %377 = arith.divf %375, %376 : vector<8x1xf32>
    %378 = vector.broadcast %377 : vector<8x1xf32> to vector<8x32xf32>
    %379 = arith.subf %373, %378 : vector<8x32xf32>
    %380 = arith.mulf %379, %379 : vector<8x32xf32>
    %cst_73 = arith.constant dense<0.000000e+00> : vector<8xf32>
    %381 = vector.multi_reduction <add>, %380, %cst_73 [1] : vector<8x32xf32> to vector<8xf32>
    %382 = vector.shape_cast %381 : vector<8xf32> to vector<8x1xf32>
    %cst_74 = arith.constant 3.200000e+01 : f32
    %383 = vector.broadcast %cst_74 : f32 to vector<8x1xf32>
    %384 = arith.divf %382, %383 : vector<8x1xf32>
    %cst_75 = arith.constant 9.99999974E-6 : f32
    %385 = vector.broadcast %cst_75 : f32 to vector<8x1xf32>
    %386 = arith.addf %384, %385 : vector<8x1xf32>
    %387 = math.rsqrt %386 : vector<8x1xf32>
    %388 = vector.broadcast %387 : vector<8x1xf32> to vector<8x32xf32>
    %389 = arith.mulf %379, %388 : vector<8x32xf32>
    %390 = vector.broadcast %26 : vector<1x32xf32> to vector<8x32xf32>
    %391 = arith.mulf %389, %390 : vector<8x32xf32>
    %392 = vector.broadcast %27 : vector<1x32xf32> to vector<8x32xf32>
    %393 = arith.addf %391, %392 : vector<8x32xf32>
    %394 = arith.truncf %277 : vector<8x32xf32> to vector<8x32xbf16>
    %cst_76 = arith.constant dense<0.000000e+00> : vector<8x32xf32>
    %395 = tpu.matmul %394, %30, %cst_76 {dimension_numbers = #tpu.dot_dimension_numbers<[1], [0], [0], [1], [0, 0, 1, 1], [], []>} : vector<8x32xbf16>, vector<32x32xbf16>, vector<8x32xf32> -> vector<8x32xf32>
    %396 = vector.broadcast %35 : vector<1x32xf32> to vector<8x32xf32>
    %397 = arith.addf %395, %396 : vector<8x32xf32>
    %398 = arith.truncf %393 : vector<8x32xf32> to vector<8x32xbf16>
    %cst_77 = arith.constant dense<0.000000e+00> : vector<8x64xf32>
    %399 = tpu.matmul %398, %31, %cst_77 {dimension_numbers = #tpu.dot_dimension_numbers<[1], [0], [0], [1], [0, 0, 1, 1], [], []>} : vector<8x32xbf16>, vector<32x64xbf16>, vector<8x64xf32> -> vector<8x64xf32>
    %400 = vector.broadcast %36 : vector<1x64xf32> to vector<8x64xf32>
    %401 = arith.addf %399, %400 : vector<8x64xf32>
    %402 = vector.extract_strided_slice %401 {offsets = [0, 0], sizes = [8, 32], strides = [1, 1]} : vector<8x64xf32> to vector<8x32xf32>
    %403 = vector.extract_strided_slice %401 {offsets = [0, 32], sizes = [8, 32], strides = [1, 1]} : vector<8x64xf32> to vector<8x32xf32>
    %404 = arith.truncf %397 : vector<8x32xf32> to vector<8x32xbf16>
    %405 = vector.extract_strided_slice %404 {offsets = [0, 0], sizes = [8, 8], strides = [1, 1]} : vector<8x32xbf16> to vector<8x8xbf16>
    %406 = vector.extract_strided_slice %404 {offsets = [0, 8], sizes = [8, 8], strides = [1, 1]} : vector<8x32xbf16> to vector<8x8xbf16>
    %407 = vector.extract_strided_slice %404 {offsets = [0, 16], sizes = [8, 8], strides = [1, 1]} : vector<8x32xbf16> to vector<8x8xbf16>
    %408 = vector.extract_strided_slice %404 {offsets = [0, 24], sizes = [8, 8], strides = [1, 1]} : vector<8x32xbf16> to vector<8x8xbf16>
    %409 = vector.shape_cast %405 : vector<8x8xbf16> to vector<1x8x8xbf16>
    %410 = vector.shape_cast %406 : vector<8x8xbf16> to vector<1x8x8xbf16>
    %411 = vector.shape_cast %407 : vector<8x8xbf16> to vector<1x8x8xbf16>
    %412 = vector.shape_cast %408 : vector<8x8xbf16> to vector<1x8x8xbf16>
    %413 = tpu.concatenate %409, %410, %411, %412 in 0 : vector<1x8x8xbf16>, vector<1x8x8xbf16>, vector<1x8x8xbf16>, vector<1x8x8xbf16> -> vector<4x8x8xbf16>
    %414 = arith.truncf %402 : vector<8x32xf32> to vector<8x32xbf16>
    %415 = vector.extract_strided_slice %414 {offsets = [0, 0], sizes = [8, 8], strides = [1, 1]} : vector<8x32xbf16> to vector<8x8xbf16>
    %416 = vector.extract_strided_slice %414 {offsets = [0, 8], sizes = [8, 8], strides = [1, 1]} : vector<8x32xbf16> to vector<8x8xbf16>
    %417 = vector.extract_strided_slice %414 {offsets = [0, 16], sizes = [8, 8], strides = [1, 1]} : vector<8x32xbf16> to vector<8x8xbf16>
    %418 = vector.extract_strided_slice %414 {offsets = [0, 24], sizes = [8, 8], strides = [1, 1]} : vector<8x32xbf16> to vector<8x8xbf16>
    %419 = vector.shape_cast %415 : vector<8x8xbf16> to vector<1x8x8xbf16>
    %420 = vector.shape_cast %416 : vector<8x8xbf16> to vector<1x8x8xbf16>
    %421 = vector.shape_cast %417 : vector<8x8xbf16> to vector<1x8x8xbf16>
    %422 = vector.shape_cast %418 : vector<8x8xbf16> to vector<1x8x8xbf16>
    %423 = tpu.concatenate %419, %420, %421, %422 in 0 : vector<1x8x8xbf16>, vector<1x8x8xbf16>, vector<1x8x8xbf16>, vector<1x8x8xbf16> -> vector<4x8x8xbf16>
    %424 = arith.truncf %403 : vector<8x32xf32> to vector<8x32xbf16>
    %425 = vector.extract_strided_slice %424 {offsets = [0, 0], sizes = [8, 8], strides = [1, 1]} : vector<8x32xbf16> to vector<8x8xbf16>
    %426 = vector.extract_strided_slice %424 {offsets = [0, 8], sizes = [8, 8], strides = [1, 1]} : vector<8x32xbf16> to vector<8x8xbf16>
    %427 = vector.extract_strided_slice %424 {offsets = [0, 16], sizes = [8, 8], strides = [1, 1]} : vector<8x32xbf16> to vector<8x8xbf16>
    %428 = vector.extract_strided_slice %424 {offsets = [0, 24], sizes = [8, 8], strides = [1, 1]} : vector<8x32xbf16> to vector<8x8xbf16>
    %429 = vector.shape_cast %425 : vector<8x8xbf16> to vector<1x8x8xbf16>
    %430 = vector.shape_cast %426 : vector<8x8xbf16> to vector<1x8x8xbf16>
    %431 = vector.shape_cast %427 : vector<8x8xbf16> to vector<1x8x8xbf16>
    %432 = vector.shape_cast %428 : vector<8x8xbf16> to vector<1x8x8xbf16>
    %433 = tpu.concatenate %429, %430, %431, %432 in 0 : vector<1x8x8xbf16>, vector<1x8x8xbf16>, vector<1x8x8xbf16>, vector<1x8x8xbf16> -> vector<4x8x8xbf16>
    "tpu.trace_start"() <{level = 10 : i32, message = "hqd,hkd->hqk"}> : () -> ()
    %cst_78 = arith.constant dense<0.000000e+00> : vector<4x8x8xf32>
    %434 = tpu.matmul %413, %423, %cst_78 {dimension_numbers = #tpu.dot_dimension_numbers<[2], [2], [1], [1], [0, 0, 0, 1, 1, 1], [0], [0]>} : vector<4x8x8xbf16>, vector<4x8x8xbf16>, vector<4x8x8xf32> -> vector<4x8x8xf32>
    "tpu.trace_stop"() : () -> ()
    %cst_79 = arith.constant dense<0xFF800000> : vector<4x8xf32>
    %435 = vector.multi_reduction <maximumf>, %434, %cst_79 [2] : vector<4x8x8xf32> to vector<4x8xf32>
    %436 = vector.shape_cast %435 : vector<4x8xf32> to vector<4x8x1xf32>
    %437 = vector.broadcast %436 : vector<4x8x1xf32> to vector<4x8x8xf32>
    %438 = arith.subf %434, %437 : vector<4x8x8xf32>
    %439 = math.exp %438 : vector<4x8x8xf32>
    %cst_80 = arith.constant dense<0.000000e+00> : vector<4x8xf32>
    %440 = vector.multi_reduction <add>, %439, %cst_80 [2] : vector<4x8x8xf32> to vector<4x8xf32>
    %441 = vector.shape_cast %440 : vector<4x8xf32> to vector<4x8x1xf32>
    %442 = tpu.reciprocal %441 {approx = true} : vector<4x8x1xf32> -> vector<4x8x1xf32>
    %443 = vector.broadcast %442 : vector<4x8x1xf32> to vector<4x8x8xf32>
    %444 = arith.mulf %439, %443 : vector<4x8x8xf32>
    %445 = arith.truncf %444 : vector<4x8x8xf32> to vector<4x8x8xbf16>
    "tpu.trace_start"() <{level = 10 : i32, message = "hqk,hkd->hqd"}> : () -> ()
    %cst_81 = arith.constant dense<0.000000e+00> : vector<4x8x8xf32>
    %446 = tpu.matmul %445, %433, %cst_81 {dimension_numbers = #tpu.dot_dimension_numbers<[2], [1], [1], [2], [0, 0, 0, 1, 1, 2], [0], [0]>} : vector<4x8x8xbf16>, vector<4x8x8xbf16>, vector<4x8x8xf32> -> vector<4x8x8xf32>
    "tpu.trace_stop"() : () -> ()
    %447 = vector.extract_strided_slice %446 {offsets = [0, 0, 0], sizes = [1, 8, 8], strides = [1, 1, 1]} : vector<4x8x8xf32> to vector<1x8x8xf32>
    %448 = vector.shape_cast %447 : vector<1x8x8xf32> to vector<8x8xf32>
    %449 = vector.extract_strided_slice %446 {offsets = [1, 0, 0], sizes = [1, 8, 8], strides = [1, 1, 1]} : vector<4x8x8xf32> to vector<1x8x8xf32>
    %450 = vector.shape_cast %449 : vector<1x8x8xf32> to vector<8x8xf32>
    %451 = vector.extract_strided_slice %446 {offsets = [2, 0, 0], sizes = [1, 8, 8], strides = [1, 1, 1]} : vector<4x8x8xf32> to vector<1x8x8xf32>
    %452 = vector.shape_cast %451 : vector<1x8x8xf32> to vector<8x8xf32>
    %453 = vector.extract_strided_slice %446 {offsets = [3, 0, 0], sizes = [1, 8, 8], strides = [1, 1, 1]} : vector<4x8x8xf32> to vector<1x8x8xf32>
    %454 = vector.shape_cast %453 : vector<1x8x8xf32> to vector<8x8xf32>
    %455 = tpu.concatenate %448, %450, %452, %454 in 1 : vector<8x8xf32>, vector<8x8xf32>, vector<8x8xf32>, vector<8x8xf32> -> vector<8x32xf32>
    %456 = arith.truncf %455 : vector<8x32xf32> to vector<8x32xbf16>
    %cst_82 = arith.constant dense<0.000000e+00> : vector<8x32xf32>
    %457 = tpu.matmul %456, %32, %cst_82 {dimension_numbers = #tpu.dot_dimension_numbers<[1], [0], [0], [1], [0, 0, 1, 1], [], []>} : vector<8x32xbf16>, vector<32x32xbf16>, vector<8x32xf32> -> vector<8x32xf32>
    %458 = vector.broadcast %37 : vector<1x32xf32> to vector<8x32xf32>
    %459 = arith.addf %457, %458 : vector<8x32xf32>
    %460 = arith.addf %277, %459 : vector<8x32xf32>
    %cst_83 = arith.constant dense<0.000000e+00> : vector<8xf32>
    %461 = vector.multi_reduction <add>, %460, %cst_83 [1] : vector<8x32xf32> to vector<8xf32>
    %462 = vector.shape_cast %461 : vector<8xf32> to vector<8x1xf32>
    %cst_84 = arith.constant 3.200000e+01 : f32
    %463 = vector.broadcast %cst_84 : f32 to vector<8x1xf32>
    %464 = arith.divf %462, %463 : vector<8x1xf32>
    %465 = vector.broadcast %464 : vector<8x1xf32> to vector<8x32xf32>
    %466 = arith.subf %460, %465 : vector<8x32xf32>
    %467 = arith.mulf %466, %466 : vector<8x32xf32>
    %cst_85 = arith.constant dense<0.000000e+00> : vector<8xf32>
    %468 = vector.multi_reduction <add>, %467, %cst_85 [1] : vector<8x32xf32> to vector<8xf32>
    %469 = vector.shape_cast %468 : vector<8xf32> to vector<8x1xf32>
    %cst_86 = arith.constant 3.200000e+01 : f32
    %470 = vector.broadcast %cst_86 : f32 to vector<8x1xf32>
    %471 = arith.divf %469, %470 : vector<8x1xf32>
    %cst_87 = arith.constant 9.99999974E-6 : f32
    %472 = vector.broadcast %cst_87 : f32 to vector<8x1xf32>
    %473 = arith.addf %471, %472 : vector<8x1xf32>
    %474 = math.rsqrt %473 : vector<8x1xf32>
    %475 = vector.broadcast %474 : vector<8x1xf32> to vector<8x32xf32>
    %476 = arith.mulf %466, %475 : vector<8x32xf32>
    %477 = vector.broadcast %40 : vector<1x32xf32> to vector<8x32xf32>
    %478 = arith.mulf %476, %477 : vector<8x32xf32>
    %479 = vector.broadcast %41 : vector<1x32xf32> to vector<8x32xf32>
    %480 = arith.addf %478, %479 : vector<8x32xf32>
    %481 = arith.truncf %480 : vector<8x32xf32> to vector<8x32xbf16>
    %cst_88 = arith.constant dense<0.000000e+00> : vector<8x32xf32>
    %482 = tpu.matmul %481, %33, %cst_88 {dimension_numbers = #tpu.dot_dimension_numbers<[1], [0], [0], [1], [0, 0, 1, 1], [], []>} : vector<8x32xbf16>, vector<32x32xbf16>, vector<8x32xf32> -> vector<8x32xf32>
    %483 = vector.broadcast %38 : vector<1x32xf32> to vector<8x32xf32>
    %484 = arith.addf %482, %483 : vector<8x32xf32>
    %cst_89 = arith.constant 0.000000e+00 : f32
    %485 = vector.broadcast %cst_89 : f32 to vector<8x32xf32>
    %486 = arith.maximumf %484, %485 : vector<8x32xf32>
    %487 = arith.truncf %486 : vector<8x32xf32> to vector<8x32xbf16>
    %cst_90 = arith.constant dense<0.000000e+00> : vector<8x32xf32>
    %488 = tpu.matmul %487, %34, %cst_90 {dimension_numbers = #tpu.dot_dimension_numbers<[1], [0], [0], [1], [0, 0, 1, 1], [], []>} : vector<8x32xbf16>, vector<32x32xbf16>, vector<8x32xf32> -> vector<8x32xf32>
    %489 = vector.broadcast %39 : vector<1x32xf32> to vector<8x32xf32>
    %490 = arith.addf %488, %489 : vector<8x32xf32>
    %491 = arith.addf %480, %490 : vector<8x32xf32>
    %cst_91 = arith.constant dense<0.000000e+00> : vector<8xf32>
    %492 = vector.multi_reduction <add>, %491, %cst_91 [1] : vector<8x32xf32> to vector<8xf32>
    %493 = vector.shape_cast %492 : vector<8xf32> to vector<8x1xf32>
    %cst_92 = arith.constant 3.200000e+01 : f32
    %494 = vector.broadcast %cst_92 : f32 to vector<8x1xf32>
    %495 = arith.divf %493, %494 : vector<8x1xf32>
    %496 = vector.broadcast %495 : vector<8x1xf32> to vector<8x32xf32>
    %497 = arith.subf %491, %496 : vector<8x32xf32>
    %498 = arith.mulf %497, %497 : vector<8x32xf32>
    %cst_93 = arith.constant dense<0.000000e+00> : vector<8xf32>
    %499 = vector.multi_reduction <add>, %498, %cst_93 [1] : vector<8x32xf32> to vector<8xf32>
    %500 = vector.shape_cast %499 : vector<8xf32> to vector<8x1xf32>
    %cst_94 = arith.constant 3.200000e+01 : f32
    %501 = vector.broadcast %cst_94 : f32 to vector<8x1xf32>
    %502 = arith.divf %500, %501 : vector<8x1xf32>
    %cst_95 = arith.constant 9.99999974E-6 : f32
    %503 = vector.broadcast %cst_95 : f32 to vector<8x1xf32>
    %504 = arith.addf %502, %503 : vector<8x1xf32>
    %505 = math.rsqrt %504 : vector<8x1xf32>
    %506 = vector.broadcast %505 : vector<8x1xf32> to vector<8x32xf32>
    %507 = arith.mulf %497, %506 : vector<8x32xf32>
    %508 = vector.broadcast %42 : vector<1x32xf32> to vector<8x32xf32>
    %509 = arith.mulf %507, %508 : vector<8x32xf32>
    %510 = vector.broadcast %43 : vector<1x32xf32> to vector<8x32xf32>
    %511 = arith.addf %509, %510 : vector<8x32xf32>
    %c0_96 = arith.constant 0 : index
    %c0_97 = arith.constant 0 : index
    %c0_98 = arith.constant 0 : index
    %512 = vector.load %arg8[%c0_96, %c0_97, %c0_98] : memref<1x8x32xf32, #tpu.memory_space<vmem>>, vector<1x8x32xf32>
    %513 = vector.shape_cast %512 : vector<1x8x32xf32> to vector<8x32xf32>
    %514 = vector.shape_cast %511 : vector<8x32xf32> to vector<1x8x32xf32>
    tpu.vector_store %arg8[%c0_96, %c0_97, %c0_98], %514 {strides = array<i32>} : memref<1x8x32xf32, #tpu.memory_space<vmem>>, vector<1x8x32xf32>,
    return
  }
  func.func @transform_0(%arg0: i32) -> (i32, i32, i32) {
    %c0_i32 = arith.constant 0 : i32
    %c0_i32_0 = arith.constant 0 : i32
    %c0_i32_1 = arith.constant 0 : i32
    return %arg0, %c0_i32, %c0_i32_0 : i32, i32, i32
  }
  func.func @transform_1(%arg0: i32) -> (i32, i32, i32) {
    %c0_i32 = arith.constant 0 : i32
    %c0_i32_0 = arith.constant 0 : i32
    %c0_i32_1 = arith.constant 0 : i32
    return %arg0, %c0_i32, %c0_i32_0 : i32, i32, i32
  }
  func.func @transform_2(%arg0: i32) -> (i32, i32, i32) {
    %c0_i32 = arith.constant 0 : i32
    %c0_i32_0 = arith.constant 0 : i32
    %c0_i32_1 = arith.constant 0 : i32
    return %arg0, %c0_i32, %c0_i32_0 : i32, i32, i32
  }
  func.func @transform_3(%arg0: i32) -> (i32, i32) {
    %c0_i32 = arith.constant 0 : i32
    %c0_i32_0 = arith.constant 0 : i32
    %c0_i32_1 = arith.constant 0 : i32
    return %c0_i32, %c0_i32_0 : i32, i32
  }
  func.func @transform_4(%arg0: i32) -> (i32, i32) {
    %c0_i32 = arith.constant 0 : i32
    %c0_i32_0 = arith.constant 0 : i32
    %c0_i32_1 = arith.constant 0 : i32
    return %c0_i32, %c0_i32_0 : i32, i32
  }
  func.func @transform_5(%arg0: i32) -> (i32, i32) {
    %c0_i32 = arith.constant 0 : i32
    %c0_i32_0 = arith.constant 0 : i32
    %c0_i32_1 = arith.constant 0 : i32
    return %c0_i32, %c0_i32_0 : i32, i32
  }
  func.func @transform_6(%arg0: i32) -> (i32, i32) {
    %c0_i32 = arith.constant 0 : i32
    %c0_i32_0 = arith.constant 0 : i32
    %c0_i32_1 = arith.constant 0 : i32
    return %c0_i32, %c0_i32_0 : i32, i32
  }
  func.func @transform_7(%arg0: i32) -> (i32, i32, i32) {
    %c0_i32 = arith.constant 0 : i32
    %c0_i32_0 = arith.constant 0 : i32
    %c0_i32_1 = arith.constant 0 : i32
    return %arg0, %c0_i32, %c0_i32_0 : i32, i32, i32
  }
}

</mosaic_0001>

<bundles_post_ra>
// kernel: tnp_transformer_masked_encoder.1
= control target key start
LH: loop header
LB: loop body
LE: loop exit
PB: predicated region body
PF: predicated region fallthrough
CT: control target
= control target key end

     0   :  { %s3586_s0 = inlined_call_operand.hbm [shape: f32[2,8,32], index: 0, kind: input, shape index: {}]   ;;  %s3587_s1 = inlined_call_operand.hbm [shape: f32[2,8,32], index: 1, kind: input, shape index: {}]   ;;  %s3588_s2 = inlined_call_operand.hbm [shape: f32[2,8,8], index: 2, kind: input, shape index: {}]   ;;  %s3589_s3 = inlined_call_operand.hbm [shape: bf16[32,192], index: 3, kind: input, shape index: {}]   ;;  %s3590_s4 = inlined_call_operand.hbm [shape: f32[8,96], index: 4, kind: input, shape index: {}]   ;;  %s3591_s5 = inlined_call_operand.hbm [shape: bf16[32,192], index: 5, kind: input, shape index: {}]   ;;  %s3592_s6 = inlined_call_operand.hbm [shape: f32[8,96], index: 6, kind: input, shape index: {}]   ;;  %s3593_s7 = inlined_call_operand.hbm [shape: f32[2,8,32], index: 7, kind: output, shape index: {}]  }
   0x1   :  { %3598 = sst [smem:[#allocation22_spill]] %s3587_s1 }
   0x2   :  { %3599 = sst [smem:[#allocation23_spill]] %s3589_s3 }
   0x3   :  { %3600 = sst [smem:[#allocation24_spill]] %s3590_s4 }
   0x4   :  { %3601 = sst [smem:[#allocation25_spill]] %s3591_s5 }
   0x5   :  { %3602 = sst [smem:[#allocation26_spill]] %s3592_s6 }
   0x6   :  { %12 = vsyncpa [#allocation3], 0 }
   0x7   :  { %14 = vsyncpa [#allocation3 + $0x1], 0 }
   0x8   :  { %15 = vsyncpa [#allocation6], 0 }
   0x9   :  { %17 = vsyncpa [#allocation6 + $0x1], 0 }
   0xa   :  { %18 = vsyncpa [#allocation9], 0 }
   0xb   :  { %19 = vsyncpa [#allocation12], 0 }
   0xc   :  { %20 = vsyncpa [#allocation4], 0 }
   0xd   :  { %22 = vsyncpa [#allocation4 + $0x1], 0  ;;  %s2868_s24 = smov 0   ;;  %s2870_s25 = smov 0  }
   0xe   :  { %s2872_s26 = smov 0   ;;  %s2874_s27 = smov 0  }
   0xf LB: > { %s3603_s3 = sld [smem:[#allocation23_spill]]  ;;  %s2892_s8 = sadd.s32 4294967295, %s2809_s27   ;;  %s2809_s27 = sphi %s2874_s27, %s3622_s27   ;;  %s2805_s26 = sphi %s2872_s26, %s3626_s26   ;;  %s2801_s25 = sphi %s2870_s25, %s3625_s25   ;;  %s2797_s24 = sphi %s2868_s24, %s3624_s24  }
  0x10   : > { %p2214_p0 = scmp.ge.s32.totalorder %s2809_s27, 1  ;;  %p3595_p1 = scmp.eq.s32.totalorder %s2892_s8, 0 }
  0x11   : > { %p221_p2 = scmp.lt.s32.totalorder %s2809_s27, 3  ;;  %s2811_s10 = smov [#allocation8]  }
  0x12   : > { %s234_s11 = sshll.u32 %s2811_s10, 4  ;;  %s3605_s5 = sld [smem:[#allocation25_spill]]  ;;  %s235_s11 = int_to_ptr.vmem [resolvable:$true] %s234_s11 }
  0x13   : > { %p2897_p3 = pnand %p2214_p0, %p221_p2  ;;  %s2812_s16 = smov [#allocation11]  }
  0x14   : > { %s260_s17 = sshll.u32 %s2812_s16, 4  ;;  %s2813_s18 = smov 128   ;;  %s261_s17 = int_to_ptr.vmem [resolvable:$true] %s260_s17 }
  0x15   : > { %s232_s30 = sshll.u32 %s3603_s3, 4  ;;  %p2353_p4 = pneg %p2897_p3  ;;  %s233_s30 = int_to_ptr.hbm [resolvable:$true] %s232_s30 }
  0x16   : > { %s2814_s19 = smov 8   ;;  %s2213_s20 = sadd.s32 4294967294, %s2809_s27  }
  0x17   : > { %p2909_p6 = pnand %p2353_p4, %p3595_p1  ;;  %s2919_s21 = sadd.s32 1, %s2809_s27  }
  0x18   : > { %s258_s14 = sshll.u32 %s3605_s5, 4  ;;  %3607 = sst [smem:[#allocation20_spill]] %s2919_s21  ;;  %s259_s14 = int_to_ptr.hbm [resolvable:$true] %s258_s14 }
  0x19   : > { %2356 = dma.hbm_to_vmem [thread:$0]  (!%p2909_p6), %s233_s30, 512, %s235_s11, [#allocation9], %s2813_s18, %s2813_s18, %s2814_s19  }
  0x1a   : > { %2362 = dma.hbm_to_vmem [thread:$0]  (!%p2909_p6), %s259_s14, 512, %s261_s17, [#allocation12], %s2813_s18, %s2813_s18, %s2814_s19  }
  0x1b   : > { %s32_s22 = ssub.s32 %s2809_s27, %s2919_s21  ;;  %s35_s23 = sadd.s32 1, %s2805_s26 }
  0x1c   : > { %p33_p7 = scmp.eq.s32.totalorder %s32_s22, 0  ;;  %p42_p8 = scmp.ne.s32.totalorder %s2805_s26, %s2801_s25 }
  0x1d   : > { %p43_p9 = scmp.eq.s32.totalorder %s2809_s27, 0  ;;  %p48_p10 = scmp.ne.s32.totalorder %s2801_s25, %s2797_s24 }
  0x1e   : > { %s2930_s28 = scalar_select %p33_p7, %s2805_s26, %s35_s23  }
  0x1f   : > { %p44_p11 = por %p43_p9, %p42_p8  ;;  %p2934_p12 = por %p3595_p1, %p48_p10 }
  0x20   : > { %3608 = sst [smem:[#allocation21_spill]] %s2930_s28  ;;  %p208_p13 = scmp.eq.s32.totalorder %s2892_s8, 1 }
  0x21   : > { %p214_p0 = scmp.eq.s32.totalorder %s2213_s20, 1  ;;  %p2384_p2 = scmp.lt.s32.totalorder %s2809_s27, 2 }
  0x22   : > { %s3594_s30 = sand.u32 1, %s2805_s26   ;;  %p2941_p4 = por %p208_p13, %p42_p8 }
  0x23   : > { %p2945_p5 = por %p214_p0, %p48_p10  ;;  %s2951_s12 = sshll.u32 %s3594_s30, 3 }
  0x24   : > { %s2954_s13 = sshll.u32 %s2809_s27, 3  ;;  %p2956_p7 = pnand %p2384_p2, %p44_p11 }
  0x25   : > { %s305_s16 = sand.u32 1, %s2809_s27   ;;  %s3613_s1 = sld [smem:[#allocation22_spill]] }
  0x26   : > { %s309_s22 = scalar_lea.vmem [#allocation5], %s2951_s12  ;;  %s2966_s30 = scalar_lea.sflag [#allocation6], %s305_s16 }
  0x27   : > { %s317_s23 = sshll.u32 %s309_s22, 4  ;;  %p2585_p9 = pneg %p2956_p7  ;;  %s318_s23 = int_to_ptr.vmem [resolvable:$true] %s317_s23 }
  0x2b   : > { %s313_s19 = scalar_lea.hbm %s3613_s1, %s2954_s13  ;;  %s2588_s18 = scalar_lea.hbm %s3613_s1, 16 }
  0x2c   : > { %s315_s20 = sshll.u32 %s313_s19, 4  ;;  %s316_s20 = int_to_ptr.hbm [resolvable:$true] %s315_s20 }
  0x2d   : > { %s2581_s3 = sshra.s32 %s316_s20, 4  ;;  %s2582_s3 = int_to_ptr.hbm [resolvable:$true] %s2581_s3 }
  0x2e   : > { %s2583_s5 = scalar_lea.hbm %s2582_s3, 8  ;;  %p2589_p13 = scmp.lt.s32.totalorder %s2582_s3, %s3613_s1 }
  0x2f   : > { %p2584_p8 = scmp.ne.s32.totalorder %s2582_s3, %s2583_s5  ;;  %p2590_p0 = scmp.lt.s32.totalorder %s2588_s18, %s2583_s5 }
  0x31   : > { %p2586_p10 = pnand %p2585_p9, %p2584_p8  ;;  %p2591_p2 = por %p2590_p0, %p2589_p13 }
  0x33   : > { %p2587_p11 = pneg %p2586_p10 }
  0x35   : > { %p2592_p1 = pnand %p2591_p2, %p2587_p11 }
  0x37   : > { %2595 = shalt.err (!%p2592_p1)
}
  0x38   : > { %2372 = dma.hbm_to_vmem [thread:$0]  (!%p2956_p7), %s316_s20, 128, %s318_s23, %s2966_s30  }
  0x39   : > { %s3614_s4 = sld [smem:[#allocation24_spill]]  ;;  %s2815_s17 = smov [#allocation10]  }
  0x3a   : > { %s249_s3 = sshll.u32 %s2815_s17, 4  ;;  %s3615_s6 = sld [smem:[#allocation26_spill]]  ;;  %s250_s3 = int_to_ptr.vmem [resolvable:$true] %s249_s3 }
  0x3b   : > { %s2816_s22 = smov [#allocation13]   ;;  %s294_s23 = scalar_lea.hbm %s3586_s0, %s2954_s13 }
  0x3c   : > { %s275_s1 = sshll.u32 %s2816_s22, 4  ;;  %s290_s16 = scalar_lea.vmem [#allocation2], %s2951_s12  ;;  %s276_s1 = int_to_ptr.vmem [resolvable:$true] %s275_s1 }
  0x3d   : > { %s298_s17 = sshll.u32 %s290_s16, 4  ;;  %s3616_s5 = sand.u32 1, %s2805_s26   ;;  %s299_s17 = int_to_ptr.vmem [resolvable:$true] %s298_s17 }
  0x3e   : > { %s287_s18 = scalar_lea.sflag [#allocation3], %s3616_s5 }
  0x3f   : > { %s247_s28 = sshll.u32 %s3614_s4, 4  ;;  %s296_s4 = sshll.u32 %s294_s23, 4  ;;  %s248_s28 = int_to_ptr.hbm [resolvable:$true] %s247_s28  ;;  %s297_s4 = int_to_ptr.hbm [resolvable:$true] %s296_s4 }
  0x40   : > { %s273_s19 = sshll.u32 %s3615_s6, 4  ;;  %s2671_s6 = sshra.s32 %s297_s4, 4  ;;  %s274_s19 = int_to_ptr.hbm [resolvable:$true] %s273_s19  ;;  %s2672_s6 = int_to_ptr.hbm [resolvable:$true] %s2671_s6 }
  0x41   : > { %2359 = dma.hbm_to_vmem [thread:$0]  (!%p2909_p6), %s248_s28, 128, %s250_s3, [#allocation9]  }
  0x42   : > { %2365 = dma.hbm_to_vmem [thread:$0]  (!%p2909_p6), %s274_s19, 128, %s276_s1, [#allocation12]  }
  0x43   : > { %s2673_s28 = scalar_lea.hbm %s2672_s6, 8  ;;  %s2678_s3 = scalar_lea.hbm %s3586_s0, 16 }
  0x44   : > { %p2674_p1 = scmp.ne.s32.totalorder %s2672_s6, %s2673_s28  ;;  %p2679_p6 = scmp.lt.s32.totalorder %s2672_s6, %s3586_s0 }
  0x45   : > { %p2680_p11 = scmp.lt.s32.totalorder %s2678_s3, %s2673_s28 }
  0x46   : > { %p2676_p8 = pnand %p2674_p1, %p2585_p9 }
  0x47   : > { %p2681_p13 = por %p2680_p11, %p2679_p6 }
  0x48   : > { %p2677_p10 = pneg %p2676_p8 }
  0x4a   : > { %p2682_p0 = pnand %p2681_p13, %p2677_p10 }
  0x4c   : > { %2685 = shalt.err (!%p2682_p0)
}
  0x4d   : > { %2369 = dma.hbm_to_vmem [thread:$0]  (!%p2956_p7), %s297_s4, 128, %s299_s17, %s287_s18  }
  0x4e   : > { %s332_s23 = scalar_lea.hbm %s3588_s2, %s2954_s13  ;;  %s328_s16 = scalar_lea.vmem [#allocation7], %s2951_s12 }
  0x4f   : > { %s336_s5 = sshll.u32 %s328_s16, 4  ;;  %s334_s1 = sshll.u32 %s332_s23, 4  ;;  %s337_s5 = int_to_ptr.vmem [resolvable:$true] %s336_s5  ;;  %s335_s1 = int_to_ptr.hbm [resolvable:$true] %s334_s1 }
  0x50   : > { %s2701_s6 = sshra.s32 %s335_s1, 4  ;;  %s2708_s4 = scalar_lea.hbm %s3588_s2, 16  ;;  %s2702_s6 = int_to_ptr.hbm [resolvable:$true] %s2701_s6 }
  0x51   : > { %s2703_s28 = scalar_lea.hbm %s2702_s6, 8  ;;  %p2709_p10 = scmp.lt.s32.totalorder %s2702_s6, %s3588_s2 }
  0x52   : > { %p2704_p2 = scmp.ne.s32.totalorder %s2702_s6, %s2703_s28  ;;  %p2710_p6 = scmp.lt.s32.totalorder %s2708_s4, %s2703_s28 }
  0x54   : > { %p2706_p1 = pnand %p2704_p2, %p2585_p9  ;;  %p2711_p11 = por %p2710_p6, %p2709_p10 }
  0x56   : > { %p2707_p8 = pneg %p2706_p1 }
  0x58   : > { %p2712_p13 = pnand %p2711_p11, %p2707_p8 }
  0x5a   : > { %2715 = shalt.err (!%p2712_p13)
}
  0x5b   : > { %2375 = dma.hbm_to_vmem [thread:$0]  (!%p2956_p7), %s335_s1, 128, %s337_s5, %s2966_s30  }
  0x5c   : > { %345 = sbr.rel (%p2897_p3) target bundleno = 6991 (0x1b4f), region = 48  ;;  %s3030_s12 = sand.u32 (!%p2897_p3), 1, %s2801_s25  }
  0x5d   : > { %s3033_s13 = sshll.u32 (!%p2897_p3), %s3030_s12, 3  ;;  %s348_s19 = scalar_lea.sflag (!%p2897_p3), [#allocation3], %s3030_s12 }
  0x5e   : > { %s351_s22 = scalar_lea.vmem (!%p2897_p3), [#allocation2], %s3033_s13 }
  0x61   : > { %2776 = dma.done.wait (%p2934_p12), %s348_s19, 128  }
  0x62   : > { %2778 = vsyncadd (%p2934_p12), %s348_s19, 4294967168  ;;  %s357_s9 = sand.u32 1, %s2892_s8   ;;  %s361_s14 = scalar_lea.vmem [#allocation5], %s3033_s13 }
  0x63   : > { %s358_s30 = scalar_lea.sflag [#allocation6], %s357_s9 }
  0x64   : > { %2780 = dma.done.wait (%p2934_p12), %s358_s30, 256  }
  0x65   : > { %2782 = vsyncadd (%p2934_p12), %s358_s30, 4294967040  ;;  %s371_s21 = scalar_lea.vmem [#allocation7], %s3033_s13  ;;  %p3617_p3 = scmp.eq.s32.totalorder %s2892_s8, 0 }
  0x67   : > { %2784 = dma.done.wait (%p3617_p3), [#allocation9], 640   ;;  %p3618_p7 = pmov %p3617_p3 }
  0x68   : > { %p3619_p9 = pmov %p3617_p3 }
  0x69   : > { %2786 = vsyncadd (%p3618_p7), [#allocation9], 4294966656 }
  0x6a   : > { %2788 = dma.done.wait (%p3619_p9), [#allocation12], 640   ;;  %p3620_p0 = pmov %p3617_p3 }
  0x6b   : > { %v2241_v0 = vld [vmem:[#allocation8 + $0x10] sm:$0xf]  ;;  %v2324_v1 = vld [vmem:[#allocation8 + $0x14] sm:$0xf0]  ;;  %v2237_v2 = vld [vmem:[#allocation8] sm:$0xf] }
  0x6c   : > { %2790 = vsyncadd (%p3620_p0), [#allocation12], 4294966656  ;;  %v3056_v3 = vor.u32 %v2324_v1, %v2241_v0  ;;  %v2322_v4 = vld [vmem:[#allocation8 + $0x4] sm:$0xf0]  ;;  %v3061_v6 = vld [vmem:[%s351_s22] sm:$0xff]  ;;  %vm463_vm0 = vcmask 261120  }
  0x6d   : > { %v3059_v5 = vor.u32 %v2322_v4, %v2237_v2  ;;  %v449_v7 = vpack.c.bf16 %v3061_v6, %v3061_v6  ;;  %v3067_v8 = vld [vmem:[#allocation10] sm:$0xff]  ;;  %s2817_s29 = smov 104   ;;  %s2818_s20 = smov 120   ;;  %vm492_vm1 = vcmask 64512   ;;  %v436_v35 = vld [vmem:[%s371_s21] sm:$0xff]  ;;  %vm634_vm3 = vcmask 1043456  }
  0x6e   : > { %473 = vmatpush.bf16.msra.mxu0 %v3056_v3  ;;  %v450_v9 = vperm.slane %v3067_v8, 0  ;;  %s2819_s23 = smov 112   ;;  %s2820_s16 = smov 96   ;;  %vm437_vm2 = vcmp.ne.f32.partialorder %v436_v35, 0.0  ;;  %v2821_v36 = vmov -1e+30  }
  0x6f   : > { %v3098_v37 = vsel %vm437_vm2, 0.0, %v2821_v36  ;;  %s2822_s5 = smov 64   ;;  %s2823_s1 = smov 32   ;;  %vm727_vm4 = vcmask 130048   ;;  %vm729_vm5 = vcmask 195584  }
  0x70   : > { %s2824_s6 = smov 16   ;;  %s2825_s28 = smov 8  }
  0x71   : > { %s2826_s15 = smov 24   ;;  %s2318_s3 = sshll.u32 %s2892_s8, 3 }
  0x72   : > { %474 = vmatpush.bf16.msra.mxu0 %v3059_v5  ;;  %s2057_s18 = scalar_lea.hbm %s3593_s7, %s2318_s3  ;;  %s432_s19 = scalar_lea.vmem [#allocation14], %s3033_s13 }
  0x73   : > { %s2059_s22 = sshll.u32 %s432_s19, 4  ;;  %s2061_s9 = sshll.u32 %s2057_s18, 4  ;;  %s2060_s22 = int_to_ptr.vmem [resolvable:$true] %s2059_s22  ;;  %s2062_s9 = int_to_ptr.hbm [resolvable:$true] %s2061_s9 }
  0x74   : > { %s2047_s8 = scalar_lea.sflag [#allocation4], %s3030_s12  ;;  %s2745_s30 = sshra.s32 %s2062_s9, 4  ;;  %s2746_s30 = int_to_ptr.hbm [resolvable:$true] %s2745_s30 }
  0x75   : > { %2243 = vmatmul.msk.bf16.vlgmr.msra.gmra.mxu0 %vm463_vm0, %v449_v7  ;;  %p2752_p8 = scmp.lt.s32.totalorder %s2746_s30, %s3593_s7 }
  0xf2   : > { %v476_v10 = vpop.f32.mrf.mxu0 }
  0xf3   : > { %v477_v11 = vadd.f32 %v476_v10, %v450_v9 }
  0xf5   : > { %v480_v12 = vpack.c.bf16 %v477_v11, %v477_v11 }
  0xf7   : > { %486 = vrot.lane.b32.xlu1 %v480_v12, %s2817_s29  ;;  %482 = vrot.lane.b32.xlu0 %v480_v12, %s2818_s20  ;;  %v488_v14 = vunpack.c.l.b16 %v480_v12 }
  0xf9   : > { %v3075_v15 = vpack.c.b16 %v488_v14, %v488_v14 }
  0xfa   : > { %v478_v13 = vpop.f32.mrf.mxu0 }
  0xff   : > { %484 = vrot.lane.b32.xlu0 %v480_v12, %s2819_s23 }
 0x107   : > { %490 = vrot.lane.b32.xlu0 %v3075_v15, %s2820_s16 }
 0x169   : > { %v483_v16 = vpop.permute.xlu0 %482  ;;  %v487_v22 = vpop.permute.xlu1 %486 }
 0x16a   : > { %v512_v17 = vunpack.c.l.b16 %v483_v16  ;;  %v558_v23 = vunpack.c.l.b16 %v487_v22 }
 0x16c   : > { %v3079_v18 = vpack.c.b16 %v512_v17, %v512_v17  ;;  %v559_v26 = vpack.c.b16 %v558_v23, %v558_v23 }
 0x16e   : > { %514 = vrot.lane.b32.xlu1 %v3079_v18, %s2820_s16 }
 0x171   : > { %v485_v19 = vpop.permute.xlu0 %484 }
 0x172   : > { %v535_v20 = vunpack.c.l.b16 %v485_v19 }
 0x174   : > { %v3083_v21 = vpack.c.b16 %v535_v20, %v535_v20 }
 0x176   : > { %537 = vrot.lane.b32.xlu2 %v3083_v21, %s2820_s16 }
 0x179   : > { %v491_v24 = vpop.permute.xlu0 %490 }
 0x17a   : > { %v497_v25 = vsel %vm492_vm1, %v491_v24, 0 }
 0x17b   : > { %506 = vmatpush.bf16.xpose.msra.mxu1 %v497_v25 }
 0x17e   : > { %560 = vrot.lane.b32.xlu2 %v559_v26, %s2820_s16 }
 0x182   : > { %2244 = vmatmul.msk.bf16.vlgmr.msra.gmra.mxu1 %vm492_vm1, %v480_v12 }
 0x1d0   : > { %v538_v27 = vpop.permute.xlu2 %537 }
 0x1d1   : > { %v543_v28 = vsel %vm492_vm1, %v538_v27, 0 }
 0x1d2   : > { %552 = vmatpush.bf16.xpose.msra.mxu3 %v543_v28 }
 0x1d8   : > { %v561_v29 = vpop.permute.xlu2 %560 }
 0x1d9   : > { %2246 = vmatmul.msk.bf16.vlgmr.msra.gmra.mxu3 %vm492_vm1, %v485_v19  ;;  %v566_v30 = vsel %vm492_vm1, %v561_v29, 0 }
 0x1da   : > { %575 = vmatpush.bf16.xpose.msrb.mxu0 %v566_v30 }
 0x1e0   : > { %v515_v31 = vpop.permute.xlu1 %514 }
 0x1e1   : > { %2247 = vmatmul.msk.bf16.vlgmr.msrb.gmra.mxu0 %vm492_vm1, %v487_v22  ;;  %v520_v32 = vsel %vm492_vm1, %v515_v31, 0 }
 0x1e2   : > { %529 = vmatpush.bf16.xpose.msra.mxu2 %v520_v32 }
 0x1e9   : > { %2245 = vmatmul.msk.bf16.vlgmr.msra.gmra.mxu2 %vm492_vm1, %v483_v16 }
 0x1ff   : > { %v508_v33 = vpop.f32.mrf.mxu1 }
 0x200   : > { %v509_v44 = vadd.f32 %v508_v33, %v3098_v37 }
 0x202   : > { %v581_v47 = vsel %vm492_vm1, %v509_v44, -inf }
 0x207   : > { %v510_v34 = vpop.f32.mrf.mxu1 }
 0x25c   : > { %v554_v38 = vpop.f32.mrf.mxu3 }
 0x25d   : > { %v555_v39 = vadd.f32 %v554_v38, %v3098_v37 }
 0x25e   : > { %v577_v40 = vpop.f32.mrf.mxu0 }
 0x25f   : > { %v578_v41 = vadd.f32 %v577_v40, %v3098_v37  ;;  %v587_v42 = vsel %vm492_vm1, %v555_v39, -inf }
 0x260   : > { %588 = vmax.xlane.f32.xlu2 %v587_v42 }
 0x261   : > { %v590_v43 = vsel %vm492_vm1, %v578_v41, -inf }
 0x262   : > { %591 = vmax.xlane.f32.xlu0 %v590_v43 }
 0x264   : > { %v556_v45 = vpop.f32.mrf.mxu3 }
 0x266   : > { %v579_v46 = vpop.f32.mrf.mxu0 }
 0x268   : > { %582 = vmax.xlane.f32.xlu2 %v581_v47 }
 0x26c   : > { %v531_v48 = vpop.f32.mrf.mxu2 }
 0x26d   : > { %v532_v49 = vadd.f32 %v531_v48, %v3098_v37 }
 0x26f   : > { %v584_v50 = vsel %vm492_vm1, %v532_v49, -inf }
 0x270   : > { %585 = vmax.xlane.f32.xlu1 %v584_v50 }
 0x274   : > { %v533_v51 = vpop.f32.mrf.mxu2 }
 0x2d3   : > { %v589_v52 = vpop.xlane.xlu2 %588 }
 0x2d4   : > { %v595_v53 = vsub.f32 %v555_v39, %v589_v52 }
 0x2d5   : > { %v592_v54 = vpop.xlane.xlu0 %591 }
 0x2d6   : > { %v601_v55 = vmul.f32 1.442695, %v595_v53  ;;  %v596_v56 = vsub.f32 %v578_v41, %v592_v54 }
 0x2d8   : > { %2439 = vpow2.f32 %v601_v55  ;;  %v603_v57 = vmul.f32 1.442695, %v596_v56  ;;  %v732_v55 = vperm.slane %v3067_v8, 1 }
 0x2da   : > { %2441 = vpow2.f32 %v603_v57 }
 0x2db   : > { %v583_v4 = vpop.xlane.xlu2 %582 }
 0x2dc   : > { %v593_v7 = vsub.f32 %v509_v44, %v583_v4 }
 0x2de   : > { %v2440_v58 = vpop.eup %2439  ;;  %v597_v10 = vmul.f32 1.442695, %v593_v7 }
 0x2df   : > { %v611_v59 = vsel %vm492_vm1, %v2440_v58, 0.0 }
 0x2e0   : > { %v2442_v60 = vpop.eup %2441  ;;  %612 = vadd.xlane.f32.xlu2 %v611_v59 }
 0x2e1   : > { %v614_v61 = vsel %vm492_vm1, %v2442_v60, 0.0 }
 0x2e2   : > { %615 = vadd.xlane.f32.xlu0 %v614_v61  ;;  %v2827_v61 = vmov 32.0  }
 0x2e3   : > { %v586_v62 = vpop.xlane.xlu1 %585 }
 0x2e4   : > { %v594_v63 = vsub.f32 %v532_v49, %v586_v62 }
 0x2e6   : > { %v599_v0 = vmul.f32 1.442695, %v594_v63 }
 0x2e8   : > { %2443 = vpow2.f32 %v599_v0 }
 0x2e9   : > { %2445 = vpow2.f32 %v597_v10 }
 0x2ee   : > { %v2444_v1 = vpop.eup %2443 }
 0x2ef   : > { %v608_v2 = vsel %vm492_vm1, %v2444_v1, 0.0  ;;  %v2446_v11 = vpop.eup %2445 }
 0x2f0   : > { %609 = vadd.xlane.f32.xlu1 %v608_v2  ;;  %v605_v12 = vsel %vm492_vm1, %v2446_v11, 0.0 }
 0x2f6   : > { %693 = vrot.lane.b32.xlu0 %v559_v26, %s2822_s5 }
 0x2f8   : > { %672 = vrot.lane.b32.xlu2 %v3083_v21, %s2822_s5 }
 0x2fe   : > { %629 = vrot.lane.b32.xlu0 %v3075_v15, %s2822_s5 }
 0x300   : > { %735 = vrot.lane.b32.xlu2 %v3056_v3, %s2823_s1 }
 0x309   : > { %651 = vrot.lane.b32.xlu1 %v3079_v18, %s2822_s5 }
 0x333   : > { %606 = vadd.xlane.f32.xlu1 %v605_v12 }
 0x353   : > { %v613_v13 = vpop.xlane.xlu2 %612 }
 0x354   : > { %2447 = vrcp.f32 %v613_v13  ;;  %v2323_v13 = vld [vmem:[#allocation8 + $0x14] sm:$0xf] }
 0x355   : > { %v616_v16 = vpop.xlane.xlu0 %615 }
 0x356   : > { %2449 = vrcp.f32 %v616_v16  ;;  %v2321_v16 = vld [vmem:[#allocation8 + $0x4] sm:$0xf] }
 0x35a   : > { %v2448_v14 = vpop.eup %2447 }
 0x35b   : > { %v623_v15 = vmul.f32 %v2448_v14, %v2440_v58  ;;  %v673_v17 = vpop.permute.xlu2 %672  ;;  %v2257_v14 = vld [vmem:[#allocation8 + $0x18] sm:$0xf0] }
 0x35c   : > { %v678_v18 = vsel %vm634_vm3, %v673_v17, 0  ;;  %v2450_v20 = vpop.eup %2449  ;;  %v2253_v17 = vld [vmem:[#allocation8 + $0x8] sm:$0xf0] }
 0x35d   : > { %687 = vmatpush.bf16.msrb.mxu3 %v678_v18  ;;  %v627_v19 = vpack.c.bf16 %v623_v15, %v623_v15  ;;  %v624_v21 = vmul.f32 %v2450_v20, %v2442_v60  ;;  %v3153_v15 = vor.u32 %v2323_v13, %v2257_v14  ;;  %v3158_v18 = vor.u32 %v2321_v16, %v2253_v17 }
 0x35f   : > { %v628_v24 = vpack.c.bf16 %v624_v21, %v624_v21  ;;  %820 = vrot.lane.b32.xlu1 %v3153_v15, %s2820_s16 }
 0x360   : > { %2250 = vmatmul.msk.bf16.vlgmr.msrb.gmra.mxu3 %vm492_vm1, %v627_v19 }
 0x363   : > { %v610_v25 = vpop.xlane.xlu1 %609  ;;  %v3134_v44 = vpop.permute.xlu2 %735 }
 0x364   : > { %2451 = vrcp.f32 %v610_v25 }
 0x367   : > { %818 = vrot.lane.b32.xlu1 %v3158_v18, %s2820_s16 }
 0x368   : > { %v694_v22 = vpop.permute.xlu0 %693 }
 0x369   : > { %v699_v23 = vsel %vm634_vm3, %v694_v22, 0 }
 0x36a   : > { %708 = vmatpush.bf16.msra.mxu0 %v699_v23  ;;  %v2452_v28 = vpop.eup %2451 }
 0x36b   : > { %v622_v29 = vmul.f32 %v2452_v28, %v2444_v1  ;;  %v785_v28 = vperm.slane %v3067_v8, 4 }
 0x36d   : > { %2251 = vmatmul.msk.bf16.vlgmr.msra.gmra.mxu0 %vm492_vm1, %v628_v24  ;;  %v626_v32 = vpack.c.bf16 %v622_v29, %v622_v29 }
 0x370   : > { %v630_v26 = vpop.permute.xlu0 %629 }
 0x371   : > { %v636_v27 = vsel %vm634_vm3, %v630_v26, 0 }
 0x372   : > { %645 = vmatpush.bf16.msrb.mxu1 %v636_v27 }
 0x376   : > { %748 = vmatpush.bf16.msra.mxu1 %v3134_v44 }
 0x37b   : > { %v652_v30 = vpop.permute.xlu1 %651 }
 0x37c   : > { %v657_v31 = vsel %vm634_vm3, %v652_v30, 0  ;;  %v787_v30 = vperm.slane %v3067_v8, 5 }
 0x37d   : > { %666 = vmatpush.bf16.msrb.mxu2 %v657_v31 }
 0x380   : > { %2249 = vmatmul.msk.bf16.vlgmr.msrb.gmra.mxu2 %vm492_vm1, %v626_v32 }
 0x381   : > { %808 = vmatpush.bf16.msra.mxu2 %v3153_v15 }
 0x385   : > { %809 = vmatpush.bf16.msra.mxu2 %v3158_v18 }
 0x3a6   : > { %v607_v33 = vpop.xlane.xlu1 %606 }
 0x3a7   : > { %2453 = vrcp.f32 %v607_v33 }
 0x3a8   : > { %2455 = vrcp.f32 %v2827_v61 }
 0x3ad   : > { %v2454_v34 = vpop.eup %2453 }
 0x3ae   : > { %v621_v35 = vmul.f32 %v2454_v34, %v2446_v11  ;;  %v2456_v62 = vpop.eup %2455 }
 0x3af   : > { %v760_v63 = vmul.f32 32.0, %v2456_v62  ;;  %vm764_vm6 = vweird.f32 %v2456_v62 }
 0x3b0   : > { %v625_v36 = vpack.c.bf16 %v621_v35, %v621_v35 }
 0x3b1   : > { %v761_v0 = vsub.f32 1.0, %v760_v63 }
 0x3b2   : > { %2248 = vmatmul.msk.bf16.vlgmr.msrb.gmra.mxu1 %vm492_vm1, %v625_v36 }
 0x3b3   : > { %v762_v1 = vmul.f32 %v2456_v62, %v761_v0 }
 0x3b5   : > { %v763_v2 = vadd.f32 %v2456_v62, %v762_v1 }
 0x3b7   : > { %v3149_v4 = vsel %vm764_vm6, %v2456_v62, %v763_v2  ;;  %v3205_v2 = vld [vmem:[%s361_s14] sm:$0xff]  ;;  %s2747_s14 = scalar_lea.hbm %s2746_s30, 8 }
 0x3b8   : > { %p2748_p12 = scmp.ne.s32.totalorder %s2746_s30, %s2747_s14 }
 0x3ba   : > { %p2749_p2 = pnand %p2748_p12, %p2941_p4 }
 0x3bc   : > { %p2750_p1 = pneg %p2749_p2 }
 0x3d1   : > { %v3171_v35 = vpop.permute.xlu1 %820 }
 0x3d2   : > { %833 = vmatpush.bf16.msra.mxu3 %v3171_v35 }
 0x3d9   : > { %v3174_v36 = vpop.permute.xlu1 %818 }
 0x3da   : > { %834 = vmatpush.bf16.msra.mxu3 %v3174_v36 }
 0x3e3   : > { %v689_v38 = vpop.f32.mrf.mxu3 }
 0x3e4   : > { %719 = vrot.lane.b32.xlu2 %v689_v38, %s2824_s6  ;;  %v790_v38 = vperm.slane %v3067_v8, 2 }
 0x3ea   : > { %v710_v39 = vpop.f32.mrf.mxu0 }
 0x3eb   : > { %v691_v40 = vpop.f32.mrf.mxu3 }
 0x3ec   : > { %733 = vrot.lane.b32.xlu2 %v3059_v5, %s2823_s1 }
 0x3f2   : > { %v712_v41 = vpop.f32.mrf.mxu0 }
 0x403   : > { %v668_v42 = vpop.f32.mrf.mxu2 }
 0x404   : > { %715 = vrot.lane.b32.xlu0 %v668_v42, %s2825_s28 }
 0x40b   : > { %v670_v43 = vpop.f32.mrf.mxu2 }
 0x40c   : > { %723 = vrot.lane.b32.xlu0 %v710_v39, %s2826_s15 }
 0x42f   : > { %v647_v45 = vpop.f32.mrf.mxu1 }
 0x437   : > { %v649_v46 = vpop.f32.mrf.mxu1 }
 0x43e   : > { %v720_v47 = vpop.permute.xlu2 %719 }
 0x446   : > { %v3137_v48 = vpop.permute.xlu2 %733 }
 0x447   : > { %749 = vmatpush.bf16.msra.mxu1 %v3137_v48 }
 0x476   : > { %v716_v49 = vpop.permute.xlu0 %715 }
 0x477   : > { %v726_v50 = vsel %vm492_vm1, %v647_v45, %v716_v49  ;;  %v817_v45 = vperm.slane %v3067_v8, 3 }
 0x478   : > { %v728_v51 = vsel %vm727_vm4, %v726_v50, %v720_v47 }
 0x47e   : > { %v724_v52 = vpop.permute.xlu0 %723 }
 0x47f   : > { %v730_v53 = vsel %vm729_vm5, %v728_v51, %v724_v52  ;;  %v2269_v52 = vld [vmem:[#allocation11 + $0x10] sm:$0xf] }
 0x480   : > { %v731_v54 = vpack.c.bf16 %v730_v53, %v730_v53  ;;  %v2328_v53 = vld [vmem:[#allocation11 + $0x14] sm:$0xf0] }
 0x482   : > { %2252 = vmatmul.msk.bf16.vlgmr.msra.gmra.mxu1 %vm463_vm0, %v731_v54  ;;  %v2265_v54 = vld [vmem:[#allocation11] sm:$0xf] }
 0x4ff   : > { %v751_v56 = vpop.f32.mrf.mxu1 }
 0x500   : > { %v752_v57 = vadd.f32 %v751_v56, %v732_v55  ;;  %v3185_v56 = vor.u32 %v2328_v53, %v2269_v52 }
 0x502   : > { %v755_v58 = vadd.f32 %v752_v57, %v3061_v6  ;;  %v2326_v57 = vld [vmem:[#allocation11 + $0x4] sm:$0xf0]  ;;  %900 = vrot.lane.b32.xlu1 %v3185_v56, %s2820_s16  ;;  %890 = vmatpush.bf16.msrb.mxu0 %v3185_v56 }
 0x504   : > { %v756_v59 = vsel %vm463_vm0, %v755_v58, 0.0 }
 0x505   : > { %757 = vadd.xlane.f32.xlu0 %v756_v59 }
 0x507   : > { %v753_v60 = vpop.f32.mrf.mxu1 }
 0x574   : > { %v3197_v0 = vpop.permute.xlu1 %900 }
 0x575   : > { %917 = vmatpush.bf16.msrb.mxu1 %v3197_v0 }
 0x578   : > { %v758_v7 = vpop.xlane.xlu0 %757 }
 0x579   : > { %v766_v10 = vmul.f32 %v3149_v4, %v758_v7  ;;  %v3207_v7 = vld [vmem:[#allocation13] sm:$0xff] }
 0x57b   : > { %v767_v11 = vsub.f32 %v755_v58, %v766_v10  ;;  %v3187_v58 = vor.u32 %v2326_v57, %v2265_v54 }
 0x57d   : > { %v768_v12 = vmul.f32 %v767_v11, %v767_v11  ;;  %891 = vmatpush.bf16.msrb.mxu0 %v3187_v58 }
 0x57f   : > { %v769_v6 = vsel %vm463_vm0, %v768_v12, 0.0  ;;  %v3212_v12 = vperm.slane %v3207_v7, 0 }
 0x580   : > { %770 = vadd.xlane.f32.xlu2 %v769_v6 }
 0x5f3   : > { %v771_v19 = vpop.xlane.xlu2 %770 }
 0x5f4   : > { %v772_v20 = vmul.f32 %v771_v19, %v3149_v4 }
 0x5f6   : > { %v773_v21 = vadd.f32 1e-05, %v772_v20 }
 0x5f8   : > { %2457 = vrsqrt.f32 %v773_v21  ;;  %vm780_vm8 = vweird.f32 %v773_v21 }
 0x5fe   : > { %v2458_v22 = vpop.eup %2457 }
 0x5ff   : > { %v775_v23 = vmul.f32 %v2458_v22, %v773_v21  ;;  %vm781_vm7 = vweird.f32 %v2458_v22 }
 0x600   : > { %vm782_vm9 = vmor %vm780_vm8, %vm781_vm7 }
 0x601   : > { %v776_v24 = vmul.f32 %v2458_v22, %v775_v23 }
 0x603   : > { %v777_v25 = vmul.f32 0.5, %v776_v24  ;;  %v865_v24 = vperm.slane %v3067_v8, 7 }
 0x605   : > { %v778_v26 = vsub.f32 1.5, %v777_v25 }
 0x607   : > { %v779_v27 = vmul.f32 %v2458_v22, %v778_v26 }
 0x609   : > { %v783_v29 = vsel %vm782_vm9, %v2458_v22, %v779_v27  ;;  %v863_v22 = vperm.slane %v3067_v8, 6 }
 0x60a   : > { %v784_v31 = vmul.f32 %v783_v29, %v767_v11  ;;  %v867_v11 = vpack.c.bf16 %v3205_v2, %v3205_v2 }
 0x60c   : > { %v786_v32 = vmul.f32 %v785_v28, %v784_v31  ;;  %2271 = vmatmul.msk.bf16.vlgmr.msrb.gmra.mxu0 %vm463_vm0, %v867_v11 }
 0x60e   : > { %v788_v33 = vadd.f32 %v787_v30, %v786_v32 }
 0x610   : > { %v789_v34 = vpack.c.bf16 %v788_v33, %v788_v33 }
 0x612   : > { %2261 = vmatmul.msk.bf16.vlgmr.msra.gmra.mxu2 %vm463_vm0, %v789_v34 }
 0x689   : > { %v893_v31 = vpop.f32.mrf.mxu0 }
 0x68a   : > { %v894_v32 = vadd.f32 %v893_v31, %v3212_v12 }
 0x691   : > { %v895_v34 = vpop.f32.mrf.mxu0 }
 0x695   : > { %v811_v39 = vpop.f32.mrf.mxu2 }
 0x696   : > { %v812_v40 = vadd.f32 %v811_v39, %v790_v38 }
 0x698   : > { %v815_v41 = vmax.f32 %v812_v40, 0.0 }
 0x69a   : > { %v816_v42 = vpack.c.bf16 %v815_v41, %v815_v41 }
 0x69c   : > { %2262 = vmatmul.msk.bf16.vlgmr.msra.gmra.mxu3 %vm463_vm0, %v816_v42 }
 0x69d   : > { %v813_v43 = vpop.f32.mrf.mxu2 }
 0x71f   : > { %v836_v46 = vpop.f32.mrf.mxu3 }
 0x720   : > { %v837_v47 = vadd.f32 %v836_v46, %v817_v45 }
 0x722   : > { %v840_v49 = vadd.f32 %v837_v47, %v788_v33  ;;  %v924_v33 = vpack.c.bf16 %v894_v32, %v894_v32 }
 0x724   : > { %v841_v50 = vsel %vm463_vm0, %v840_v49, 0.0 }
 0x725   : > { %842 = vadd.xlane.f32.xlu0 %v841_v50 }
 0x727   : > { %v838_v51 = vpop.f32.mrf.mxu3 }
 0x739   : > { %898 = vrot.lane.b32.xlu0 %v3187_v58, %s2820_s16 }
 0x798   : > { %v843_v59 = vpop.xlane.xlu0 %842 }
 0x799   : > { %v844_v60 = vmul.f32 %v843_v59, %v3149_v4 }
 0x79b   : > { %v845_v61 = vsub.f32 %v840_v49, %v844_v60 }
 0x79d   : > { %v846_v62 = vmul.f32 %v845_v61, %v845_v61 }
 0x79f   : > { %v847_v63 = vsel %vm463_vm0, %v846_v62, 0.0 }
 0x7a0   : > { %848 = vadd.xlane.f32.xlu2 %v847_v63 }
 0x7ab   : > { %v3200_v1 = vpop.permute.xlu0 %898 }
 0x7ac   : > { %918 = vmatpush.bf16.msrb.mxu1 %v3200_v1 }
 0x7b8   : > { %905 = vrot.lane.b32.xlu2 %v3212_v12, %s2820_s16 }
 0x7c0   : > { %928 = vrot.lane.b32.xlu2 %v924_v33, %s2819_s23 }
 0x813   : > { %v849_v10 = vpop.xlane.xlu2 %848 }
 0x814   : > { %v850_v6 = vmul.f32 %v849_v10, %v3149_v4 }
 0x816   : > { %v851_v13 = vadd.f32 1e-05, %v850_v6 }
 0x818   : > { %2459 = vrsqrt.f32 %v851_v13  ;;  %vm858_vm11 = vweird.f32 %v851_v13 }
 0x81b   : > { %v3234_v39 = vpop.permute.xlu2 %905 }
 0x81e   : > { %v2460_v14 = vpop.eup %2459 }
 0x81f   : > { %v853_v16 = vmul.f32 %v2460_v14, %v851_v13  ;;  %vm859_vm10 = vweird.f32 %v2460_v14 }
 0x820   : > { %vm860_vm12 = vmor %vm858_vm11, %vm859_vm10 }
 0x821   : > { %v854_v17 = vmul.f32 %v2460_v14, %v853_v16 }
 0x823   : > { %v855_v19 = vmul.f32 0.5, %v854_v17  ;;  %v929_v52 = vpop.permute.xlu2 %928 }
 0x825   : > { %v856_v20 = vsub.f32 1.5, %v855_v19 }
 0x827   : > { %v857_v21 = vmul.f32 %v2460_v14, %v856_v20 }
 0x829   : > { %v861_v23 = vsel %vm860_vm12, %v2460_v14, %v857_v21 }
 0x82a   : > { %v862_v25 = vmul.f32 %v861_v23, %v845_v61 }
 0x82c   : > { %v864_v26 = vmul.f32 %v863_v22, %v862_v25 }
 0x82e   : > { %v3224_v27 = vadd.f32 %v865_v24, %v864_v26 }
 0x830   : > { %v3228_v29 = vpack.c.bf16 %v3224_v27, %v3224_v27 }
 0x832   : > { %2272 = vmatmul.msk.bf16.vlgmr.msrb.gmra.mxu1 %vm463_vm0, %v3228_v29 }
 0x8af   : > { %v920_v40 = vpop.f32.mrf.mxu1 }
 0x8b0   : > { %v921_v41 = vadd.f32 %v920_v40, %v3234_v39 }
 0x8b2   : > { %v3237_v42 = vpack.c.bf16 %v921_v41, %v921_v41 }
 0x8b4   : > { %936 = vrot.lane.b32.xlu0 %v3237_v42, %s2819_s23  ;;  %934 = vrot.lane.b32.xlu1 %v3237_v42, %s2818_s20  ;;  %v944_v43 = vsel %vm492_vm1, %v3237_v42, 0 }
 0x8b5   : > { %953 = vmatpush.bf16.xpose.msrb.mxu2 %v944_v43 }
 0x8b7   : > { %v922_v46 = vpop.f32.mrf.mxu1 }
 0x8bc   : > { %926 = vrot.lane.b32.xlu1 %v924_v33, %s2818_s20  ;;  %2273 = vmatmul.msk.bf16.vlgmr.msrb.gmra.mxu2 %vm492_vm1, %v924_v33 }
 0x8bd   : > { %930 = vrot.lane.b32.xlu0 %v924_v33, %s2817_s29 }
 0x8c4   : > { %938 = vrot.lane.b32.xlu1 %v3237_v42, %s2817_s29 }
 0x926   : > { %v937_v47 = vpop.permute.xlu0 %936  ;;  %v935_v49 = vpop.permute.xlu1 %934 }
 0x927   : > { %v982_v50 = vsel %vm492_vm1, %v937_v47, 0  ;;  %v963_v51 = vsel %vm492_vm1, %v935_v49, 0 }
 0x928   : > { %972 = vmatpush.bf16.xpose.msrb.mxu3 %v963_v51  ;;  %991 = vmatpush.bf16.xpose.msra.mxu0 %v982_v50  ;;  %v1110_v51 = vunpack.c.l.b16 %v937_v47 }
 0x92e   : > { %v927_v53 = vpop.permute.xlu1 %926 }
 0x92f   : > { %2274 = vmatmul.msk.bf16.vlgmr.msrb.gmra.mxu3 %vm492_vm1, %v927_v53  ;;  %2275 = vmatmul.msk.bf16.vlgmr.msra.gmra.mxu0 %vm492_vm1, %v929_v52  ;;  %v931_v59 = vpop.permute.xlu0 %930  ;;  %v1111_v53 = vpack.c.b16 %v1110_v51, %v1110_v51 }
 0x936   : > { %v939_v54 = vpop.permute.xlu1 %938 }
 0x937   : > { %v1001_v57 = vsel %vm492_vm1, %v939_v54, 0 }
 0x938   : > { %1010 = vmatpush.bf16.xpose.msra.mxu1 %v1001_v57  ;;  %v1087_v57 = vunpack.c.l.b16 %v935_v49 }
 0x93f   : > { %2276 = vmatmul.msk.bf16.vlgmr.msra.gmra.mxu1 %vm492_vm1, %v931_v59  ;;  %v955_v60 = vpop.f32.mrf.mxu2  ;;  %v1088_v59 = vpack.c.b16 %v1087_v57, %v1087_v57 }
 0x940   : > { %v1016_v14 = vsel %vm492_vm1, %v955_v60, -inf }
 0x947   : > { %v957_v61 = vpop.f32.mrf.mxu2 }
 0x948   : > { %v1064_v61 = vunpack.c.l.b16 %v3237_v42 }
 0x9ac   : > { %v993_v62 = vpop.f32.mrf.mxu0 }
 0x9ad   : > { %v1022_v63 = vsel %vm492_vm1, %v993_v62, -inf }
 0x9ae   : > { %1023 = vmax.xlane.f32.xlu2 %v1022_v63  ;;  %v1065_v63 = vpack.c.b16 %v1064_v61, %v1064_v61 }
 0x9b2   : > { %v974_v10 = vpop.f32.mrf.mxu3 }
 0x9b3   : > { %v1019_v11 = vsel %vm492_vm1, %v974_v10, -inf }
 0x9b4   : > { %v995_v6 = vpop.f32.mrf.mxu0  ;;  %1020 = vmax.xlane.f32.xlu1 %v1019_v11 }
 0x9ba   : > { %v976_v13 = vpop.f32.mrf.mxu3 }
 0x9bc   : > { %v1012_v16 = vpop.f32.mrf.mxu1  ;;  %1017 = vmax.xlane.f32.xlu1 %v1016_v14 }
 0x9bd   : > { %v1025_v17 = vsel %vm492_vm1, %v1012_v16, -inf }
 0x9be   : > { %1026 = vmax.xlane.f32.xlu0 %v1025_v17 }
 0x9c4   : > { %v1014_v19 = vpop.f32.mrf.mxu1 }
 0xa21   : > { %v1024_v20 = vpop.xlane.xlu2 %1023 }
 0xa22   : > { %v1030_v21 = vsub.f32 %v993_v62, %v1024_v20  ;;  %v1133_v62 = vunpack.c.l.b16 %v939_v54 }
 0xa24   : > { %v1036_v23 = vmul.f32 1.442695, %v1030_v21 }
 0xa26   : > { %2461 = vpow2.f32 %v1036_v23 }
 0xa27   : > { %v1021_v25 = vpop.xlane.xlu1 %1020 }
 0xa28   : > { %v1029_v26 = vsub.f32 %v974_v10, %v1021_v25  ;;  %v1134_v10 = vpack.c.b16 %v1133_v62, %v1133_v62 }
 0xa2a   : > { %v1034_v31 = vmul.f32 1.442695, %v1029_v26 }
 0xa2c   : > { %v2462_v32 = vpop.eup %2461  ;;  %2463 = vpow2.f32 %v1034_v31 }
 0xa2d   : > { %v1046_v33 = vsel %vm492_vm1, %v2462_v32, 0.0 }
 0xa2e   : > { %1047 = vadd.xlane.f32.xlu0 %v1046_v33 }
 0xa2f   : > { %v1018_v11 = vpop.xlane.xlu1 %1017 }
 0xa30   : > { %v1028_v47 = vsub.f32 %v955_v60, %v1018_v11 }
 0xa31   : > { %v1027_v34 = vpop.xlane.xlu0 %1026 }
 0xa32   : > { %v2464_v40 = vpop.eup %2463  ;;  %v1031_v41 = vsub.f32 %v1012_v16, %v1027_v34  ;;  %v1032_v6 = vmul.f32 1.442695, %v1028_v47 }
 0xa33   : > { %v1043_v43 = vsel %vm492_vm1, %v2464_v40, 0.0 }
 0xa34   : > { %v1038_v46 = vmul.f32 1.442695, %v1031_v41  ;;  %1044 = vadd.xlane.f32.xlu2 %v1043_v43 }
 0xa36   : > { %2465 = vpow2.f32 %v1038_v46 }
 0xa37   : > { %2467 = vpow2.f32 %v1032_v6 }
 0xa3c   : > { %v2466_v50 = vpop.eup %2465 }
 0xa3d   : > { %v1049_v52 = vsel %vm492_vm1, %v2466_v50, 0.0  ;;  %v2468_v49 = vpop.eup %2467 }
 0xa3e   : > { %1050 = vadd.xlane.f32.xlu1 %v1049_v52  ;;  %v1040_v13 = vsel %vm492_vm1, %v2468_v49, 0.0 }
 0xa42   : > { %1112 = vrot.lane.b32.xlu0 %v1111_v53, %s2820_s16 }
 0xa4c   : > { %1089 = vrot.lane.b32.xlu2 %v1088_v59, %s2820_s16 }
 0xa54   : > { %1066 = vrot.lane.b32.xlu2 %v1065_v63, %s2820_s16 }
 0xa57   : > { %1135 = vrot.lane.b32.xlu1 %v1134_v10, %s2820_s16 }
 0xa5f   : > { %1175 = vrot.lane.b32.xlu1 %v3185_v56, %s2823_s1 }
 0xa6c   : > { %1041 = vadd.xlane.f32.xlu0 %v1040_v13  ;;  %v2327_v13 = vld [vmem:[#allocation11 + $0x14] sm:$0xf] }
 0xaa1   : > { %v1048_v14 = vpop.xlane.xlu0 %1047 }
 0xaa7   : > { %v1045_v42 = vpop.xlane.xlu2 %1044 }
 0xaa8   : > { %2469 = vrcp.f32 %v1045_v42 }
 0xaa9   : > { %2471 = vrcp.f32 %v1048_v14  ;;  %v2286_v14 = vld [vmem:[#allocation11 + $0x18] sm:$0xf0] }
 0xaaa   : > { %v3295_v42 = vor.u32 %v2327_v13, %v2286_v14 }
 0xaae   : > { %v2470_v54 = vpop.eup %2469 }
 0xaaf   : > { %v1057_v16 = vmul.f32 %v2470_v54, %v2464_v40  ;;  %v1090_v17 = vpop.permute.xlu2 %1089  ;;  %v2472_v19 = vpop.eup %2471 }
 0xab0   : > { %v1095_v20 = vsel %vm634_vm3, %v1090_v17, 0  ;;  %v1058_v21 = vmul.f32 %v2472_v19, %v2462_v32 }
 0xab1   : > { %v1061_v60 = vpack.c.bf16 %v1057_v16, %v1057_v16  ;;  %1104 = vmatpush.bf16.msra.mxu3 %v1095_v20  ;;  %v1051_v34 = vpop.xlane.xlu1 %1050 }
 0xab2   : > { %v1062_v26 = vpack.c.bf16 %v1058_v21, %v1058_v21  ;;  %2473 = vrcp.f32 %v1051_v34 }
 0xab4   : > { %v1113_v23 = vpop.permute.xlu0 %1112  ;;  %2278 = vmatmul.msk.bf16.vlgmr.msra.gmra.mxu3 %vm492_vm1, %v1061_v60 }
 0xab5   : > { %v1118_v25 = vsel %vm634_vm3, %v1113_v23, 0  ;;  %1241 = vmatpush.bf16.msrb.mxu3 %v3295_v42  ;;  %v2325_v23 = vld [vmem:[#allocation11 + $0x4] sm:$0xf] }
 0xab6   : > { %1127 = vmatpush.bf16.msrb.mxu0 %v1118_v25  ;;  %v2282_v25 = vld [vmem:[#allocation11 + $0x8] sm:$0xf0] }
 0xab7   : > { %v1067_v31 = vpop.permute.xlu2 %1066 }
 0xab8   : > { %v1072_v33 = vsel %vm634_vm3, %v1067_v31, 0  ;;  %v2474_v40 = vpop.eup %2473 }
 0xab9   : > { %1081 = vmatpush.bf16.msra.mxu2 %v1072_v33  ;;  %2279 = vmatmul.msk.bf16.vlgmr.msrb.gmra.mxu0 %vm492_vm1, %v1062_v26  ;;  %v1059_v41 = vmul.f32 %v2474_v40, %v2466_v50  ;;  %v3307_v26 = vor.u32 %v2325_v23, %v2282_v25 }
 0xabb   : > { %v1063_v46 = vpack.c.bf16 %v1059_v41, %v1059_v41  ;;  %1242 = vmatpush.bf16.msrb.mxu3 %v3307_v26 }
 0xac9   : > { %v1136_v43 = vpop.permute.xlu1 %1135 }
 0xaca   : > { %v1141_v32 = vsel %vm634_vm3, %v1136_v43, 0 }
 0xacb   : > { %1150 = vmatpush.bf16.msrb.mxu1 %v1141_v32 }
 0xace   : > { %2280 = vmatmul.msk.bf16.vlgmr.msrb.gmra.mxu1 %vm492_vm1, %v1063_v46 }
 0xacf   : > { %1306 = vmatpush.bf16.msra.mxu1 %v3056_v3 }
 0xad1   : > { %v3292_v6 = vpop.permute.xlu1 %1175 }
 0xad2   : > { %1188 = vmatpush.bf16.msrb.mxu2 %v3292_v6 }
 0xad3   : > { %1307 = vmatpush.bf16.msra.mxu1 %v3059_v5 }
 0xade   : > { %2292 = vmatmul.msk.bf16.vlgmr.msra.gmra.mxu1 %vm463_vm0, %v3228_v29 }
 0xadf   : > { %v1042_v51 = vpop.xlane.xlu0 %1041 }
 0xae0   : > { %2475 = vrcp.f32 %v1042_v51  ;;  %v1172_v51 = vperm.slane %v3207_v7, 1 }
 0xae6   : > { %v2476_v52 = vpop.eup %2475 }
 0xae7   : > { %v1056_v53 = vmul.f32 %v2476_v52, %v2468_v49 }
 0xae9   : > { %v1060_v57 = vpack.c.bf16 %v1056_v53, %v1056_v53 }
 0xaeb   : > { %2277 = vmatmul.msk.bf16.vlgmr.msra.gmra.mxu2 %vm492_vm1, %v1060_v57 }
 0xb36   : > { %v1129_v50 = vpop.f32.mrf.mxu0 }
 0xb37   : > { %v1106_v59 = vpop.f32.mrf.mxu3  ;;  %1161 = vrot.lane.b32.xlu1 %v1129_v50, %s2824_s6 }
 0xb38   : > { %1157 = vrot.lane.b32.xlu2 %v1106_v59, %s2825_s28 }
 0xb3e   : > { %v1131_v3 = vpop.f32.mrf.mxu0 }
 0xb3f   : > { %v1108_v61 = vpop.f32.mrf.mxu3  ;;  %1173 = vrot.lane.b32.xlu1 %v3187_v58, %s2823_s1 }
 0xb4b   : > { %v1152_v5 = vpop.f32.mrf.mxu1 }
 0xb4c   : > { %1165 = vrot.lane.b32.xlu2 %v1152_v5, %s2826_s15 }
 0xb53   : > { %v1154_v29 = vpop.f32.mrf.mxu1 }
 0xb5b   : > { %v1309_v62 = vpop.f32.mrf.mxu1 }
 0xb5c   : > { %v1310_v63 = vadd.f32 %v1309_v62, %v450_v9 }
 0xb5e   : > { %v1313_v10 = vpack.c.bf16 %v1310_v63, %v1310_v63 }
 0xb60   : > { %1315 = vrot.lane.b32.xlu0 %v1313_v10, %s2818_s20  ;;  %v1321_v41 = vunpack.c.l.b16 %v1313_v10 }
 0xb62   : > { %v3321_v43 = vpack.c.b16 %v1321_v41, %v1321_v41 }
 0xb63   : > { %v1311_v11 = vpop.f32.mrf.mxu1 }
 0xb68   : > { %1317 = vrot.lane.b32.xlu0 %v1313_v10, %s2819_s23 }
 0xb6e   : > { %v1083_v47 = vpop.f32.mrf.mxu2 }
 0xb70   : > { %1253 = vrot.lane.b32.xlu0 %v3295_v42, %s2820_s16 }
 0xb76   : > { %v1085_v49 = vpop.f32.mrf.mxu2 }
 0xb78   : > { %1251 = vrot.lane.b32.xlu0 %v3307_v26, %s2820_s16 }
 0xb92   : > { %v1158_v9 = vpop.permute.xlu2 %1157 }
 0xb93   : > { %v1168_v16 = vsel %vm492_vm1, %v1083_v47, %v1158_v9 }
 0xba6   : > { %v1166_v19 = vpop.permute.xlu2 %1165 }
 0xba9   : > { %v1162_v54 = vpop.permute.xlu1 %1161 }
 0xbaa   : > { %v1169_v17 = vsel %vm727_vm4, %v1168_v16, %v1162_v54 }
 0xbab   : > { %v1170_v20 = vsel %vm729_vm5, %v1169_v17, %v1166_v19 }
 0xbac   : > { %v1171_v21 = vpack.c.bf16 %v1170_v20, %v1170_v20 }
 0xbb1   : > { %v3303_v60 = vpop.permute.xlu1 %1173 }
 0xbb2   : > { %1189 = vmatpush.bf16.msrb.mxu2 %v3303_v60 }
 0xbb5   : > { %2281 = vmatmul.msk.bf16.vlgmr.msrb.gmra.mxu2 %vm463_vm0, %v1171_v21 }
 0xbd2   : > { %v3312_v31 = vpop.permute.xlu0 %1315 }
 0xbd3   : > { %v1344_v9 = vunpack.c.l.b16 %v3312_v31 }
 0xbd5   : > { %v3347_v54 = vpack.c.b16 %v1344_v9, %v1344_v9  ;;  %v1223_v9 = vperm.slane %v3207_v7, 2 }
 0xbda   : > { %v3314_v33 = vpop.permute.xlu0 %1317 }
 0xbdb   : > { %v1367_v34 = vunpack.c.l.b16 %v3314_v33 }
 0xbdd   : > { %v3317_v40 = vpack.c.b16 %v1367_v34, %v1367_v34 }
 0xbdf   : > { %1369 = vrot.lane.b32.xlu0 %v3317_v40, %s2820_s16 }
 0xbe2   : > { %v3325_v32 = vpop.permute.xlu0 %1253 }
 0xbe3   : > { %1266 = vmatpush.bf16.msra.mxu0 %v3325_v32 }
 0xbe7   : > { %1323 = vrot.lane.b32.xlu0 %v3321_v43, %s2820_s16 }
 0xbea   : > { %v3328_v46 = vpop.permute.xlu0 %1251 }
 0xbeb   : > { %1267 = vmatpush.bf16.msra.mxu0 %v3328_v46 }
 0xc38   : > { %v1191_v52 = vpop.f32.mrf.mxu2 }
 0xc39   : > { %v1192_v53 = vadd.f32 %v1191_v52, %v1172_v51 }
 0xc3b   : > { %v1195_v57 = vadd.f32 %v1192_v53, %v3205_v2 }
 0xc3d   : > { %v1196_v50 = vsel %vm463_vm0, %v1195_v57, 0.0 }
 0xc3e   : > { %1197 = vadd.xlane.f32.xlu2 %v1196_v50  ;;  %v1218_v50 = vperm.slane %v3207_v7, 4 }
 0xc40   : > { %v1193_v59 = vpop.f32.mrf.mxu2 }
 0xc51   : > { %v1370_v3 = vpop.permute.xlu0 %1369 }
 0xc52   : > { %v1375_v61 = vsel %vm492_vm1, %v1370_v3, 0  ;;  %v1220_v3 = vperm.slane %v3207_v7, 5 }
 0xc53   : > { %1384 = vmatpush.bf16.xpose.msrb.mxu0 %v1375_v61 }
 0xc56   : > { %1319 = vrot.lane.b32.xlu2 %v1313_v10, %s2817_s29 }
 0xc59   : > { %v1324_v5 = vpop.permute.xlu0 %1323 }
 0xc5a   : > { %v1329_v29 = vsel %vm492_vm1, %v1324_v5, 0 }
 0xc5b   : > { %1338 = vmatpush.bf16.xpose.msra.mxu2 %v1329_v29 }
 0xc62   : > { %2293 = vmatmul.msk.bf16.vlgmr.msra.gmra.mxu2 %vm492_vm1, %v1313_v10 }
 0xcb1   : > { %v1198_v62 = vpop.xlane.xlu2 %1197 }
 0xcb2   : > { %v1199_v63 = vmul.f32 %v1198_v62, %v3149_v4 }
 0xcb4   : > { %v1200_v2 = vsub.f32 %v1195_v57, %v1199_v63 }
 0xcb6   : > { %v1201_v11 = vmul.f32 %v1200_v2, %v1200_v2 }
 0xcb8   : > { %v1202_v47 = vsel %vm463_vm0, %v1201_v11, 0.0 }
 0xcb9   : > { %1203 = vadd.xlane.f32.xlu1 %v1202_v47  ;;  %v1320_v49 = vpop.permute.xlu2 %1319 }
 0xcba   : > { %v1390_v13 = vunpack.c.l.b16 %v1320_v49 }
 0xcbc   : > { %v3342_v14 = vpack.c.b16 %v1390_v13, %v1390_v13 }
 0xcbe   : > { %1392 = vrot.lane.b32.xlu2 %v3342_v14, %s2820_s16 }
 0xcd2   : > { %1346 = vrot.lane.b32.xlu1 %v3347_v54, %s2820_s16 }
 0xce5   : > { %v3351_v10 = vpop.f32.mrf.mxu2 }
 0xced   : > { %v1342_v16 = vpop.f32.mrf.mxu2 }
 0xd18   : > { %v1393_v17 = vpop.permute.xlu2 %1392 }
 0xd19   : > { %v1398_v19 = vsel %vm492_vm1, %v1393_v17, 0 }
 0xd1a   : > { %1407 = vmatpush.bf16.xpose.msrb.mxu1 %v1398_v19 }
 0xd21   : > { %2296 = vmatmul.msk.bf16.vlgmr.msrb.gmra.mxu1 %vm492_vm1, %v1320_v49 }
 0xd2c   : > { %v1204_v20 = vpop.xlane.xlu1 %1203 }
 0xd2d   : > { %v1205_v21 = vmul.f32 %v1204_v20, %v3149_v4 }
 0xd2f   : > { %v1206_v23 = vadd.f32 1e-05, %v1205_v21 }
 0xd31   : > { %2477 = vrsqrt.f32 %v1206_v23  ;;  %vm1213_vm14 = vweird.f32 %v1206_v23 }
 0xd37   : > { %v2478_v25 = vpop.eup %2477 }
 0xd38   : > { %v1208_v34 = vmul.f32 %v2478_v25, %v1206_v23  ;;  %vm1214_vm13 = vweird.f32 %v2478_v25 }
 0xd39   : > { %vm1215_vm15 = vmor %vm1213_vm14, %vm1214_vm13 }
 0xd3a   : > { %v1209_v41 = vmul.f32 %v2478_v25, %v1208_v34 }
 0xd3c   : > { %v1210_v52 = vmul.f32 0.5, %v1209_v41 }
 0xd3e   : > { %v1211_v53 = vsub.f32 1.5, %v1210_v52 }
 0xd40   : > { %v1212_v57 = vmul.f32 %v2478_v25, %v1211_v53 }
 0xd42   : > { %v1216_v59 = vsel %vm1215_vm15, %v2478_v25, %v1212_v57 }
 0xd43   : > { %v1217_v61 = vmul.f32 %v1216_v59, %v1200_v2 }
 0xd44   : > { %v1347_v5 = vpop.permute.xlu1 %1346 }
 0xd45   : > { %v1219_v29 = vmul.f32 %v1218_v50, %v1217_v61  ;;  %v1352_v62 = vsel %vm492_vm1, %v1347_v5, 0 }
 0xd46   : > { %1361 = vmatpush.bf16.xpose.msra.mxu3 %v1352_v62 }
 0xd47   : > { %v3363_v63 = vadd.f32 %v1220_v3, %v1219_v29 }
 0xd49   : > { %v1222_v11 = vpack.c.bf16 %v3363_v63, %v3363_v63 }
 0xd4b   : > { %2290 = vmatmul.msk.bf16.vlgmr.msrb.gmra.mxu3 %vm463_vm0, %v1222_v11 }
 0xd5b   : > { %2294 = vmatmul.msk.bf16.vlgmr.msra.gmra.mxu3 %vm492_vm1, %v3312_v31 }
 0xd9e   : > { %v1409_v2 = vpop.f32.mrf.mxu1 }
 0xd9f   : > { %v1410_v47 = vadd.f32 %v1409_v2, %v3098_v37 }
 0xda1   : > { %v1422_v49 = vsel %vm492_vm1, %v1410_v47, -inf }
 0xda2   : > { %1423 = vmax.xlane.f32.xlu0 %v1422_v49 }
 0xda6   : > { %v1411_v13 = vpop.f32.mrf.mxu1 }
 0xda7   : > { %v1341_v13 = vadd.f32 %v3351_v10, %v3098_v37 }
 0xdce   : > { %v1244_v16 = vpop.f32.mrf.mxu3 }
 0xdcf   : > { %v1245_v17 = vadd.f32 %v1244_v16, %v1223_v9 }
 0xdd1   : > { %v1248_v19 = vmax.f32 %v1245_v17, 0.0  ;;  %v1413_v17 = vsel %vm492_vm1, %v1341_v13, -inf }
 0xdd3   : > { %v1249_v20 = vpack.c.bf16 %v1248_v19, %v1248_v19 }
 0xdd5   : > { %2291 = vmatmul.msk.bf16.vlgmr.msra.gmra.mxu0 %vm463_vm0, %v1249_v20 }
 0xdd6   : > { %v1246_v21 = vpop.f32.mrf.mxu3 }
 0xdde   : > { %v1363_v23 = vpop.f32.mrf.mxu3 }
 0xddf   : > { %v1364_v31 = vadd.f32 %v1363_v23, %v3098_v37 }
 0xde1   : > { %v1416_v25 = vsel %vm492_vm1, %v1364_v31, -inf }
 0xde2   : > { %1417 = vmax.xlane.f32.xlu1 %v1416_v25 }
 0xde5   : > { %2295 = vmatmul.msk.bf16.vlgmr.msrb.gmra.mxu0 %vm492_vm1, %v3314_v33 }
 0xde6   : > { %v1365_v34 = vpop.f32.mrf.mxu3 }
 0xe15   : > { %v1424_v5 = vpop.xlane.xlu0 %1423 }
 0xe16   : > { %v1428_v2 = vsub.f32 %v1410_v47, %v1424_v5 }
 0xe18   : > { %v1435_v33 = vmul.f32 1.442695, %v1428_v2 }
 0xe52   : > { %v3380_v41 = vpop.f32.mrf.mxu0 }
 0xe55   : > { %v1418_v52 = vpop.xlane.xlu1 %1417 }
 0xe56   : > { %v1426_v53 = vsub.f32 %v1364_v31, %v1418_v52 }
 0xe58   : > { %v1431_v57 = vmul.f32 1.442695, %v1426_v53 }
 0xe5a   : > { %2479 = vpow2.f32 %v1431_v57  ;;  %v1271_v59 = vpop.f32.mrf.mxu0 }
 0xe5b   : > { %2481 = vpow2.f32 %v1435_v33 }
 0xe60   : > { %v2480_v61 = vpop.eup %2479 }
 0xe61   : > { %v1440_v29 = vsel %vm492_vm1, %v2480_v61, 0.0  ;;  %v2482_v19 = vpop.eup %2481 }
 0xe62   : > { %v1386_v62 = vpop.f32.mrf.mxu0  ;;  %1441 = vadd.xlane.f32.xlu1 %v1440_v29  ;;  %v1446_v20 = vsel %vm492_vm1, %v2482_v19, 0.0 }
 0xe63   : > { %v1387_v11 = vadd.f32 %v1386_v62, %v3098_v37 }
 0xe65   : > { %v1419_v49 = vsel %vm492_vm1, %v1387_v11, -inf }
 0xe66   : > { %1420 = vmax.xlane.f32.xlu2 %v1419_v49 }
 0xe6a   : > { %v1388_v16 = vpop.f32.mrf.mxu0 }
 0xe6e   : > { %1414 = vmax.xlane.f32.xlu2 %v1413_v17 }
 0xe76   : > { %1447 = vadd.xlane.f32.xlu2 %v1446_v20 }
 0xe7b   : > { %1482 = vrot.lane.b32.xlu1 %v3347_v54, %s2822_s5 }
 0xe83   : > { %1461 = vrot.lane.b32.xlu1 %v3321_v43, %s2822_s5 }
 0xe8e   : > { %1524 = vrot.lane.b32.xlu2 %v3342_v14, %s2822_s5 }
 0xed5   : > { %v1442_v21 = vpop.xlane.xlu1 %1441 }
 0xed9   : > { %v1421_v47 = vpop.xlane.xlu2 %1420 }
 0xeda   : > { %v1427_v37 = vsub.f32 %v1387_v11, %v1421_v47 }
 0xedc   : > { %v1433_v10 = vmul.f32 1.442695, %v1427_v37 }
 0xede   : > { %2483 = vpow2.f32 %v1433_v10 }
 0xedf   : > { %2485 = vrcp.f32 %v1442_v21 }
 0xee1   : > { %v1415_v23 = vpop.xlane.xlu2 %1414 }
 0xee4   : > { %v2484_v31 = vpop.eup %2483 }
 0xee5   : > { %v1443_v25 = vsel %vm492_vm1, %v2484_v31, 0.0  ;;  %v2486_v34 = vpop.eup %2485 }
 0xee6   : > { %1444 = vadd.xlane.f32.xlu0 %v1443_v25  ;;  %v1454_v54 = vmul.f32 %v2486_v34, %v2480_v61 }
 0xee8   : > { %v1458_v57 = vpack.c.bf16 %v1454_v54, %v1454_v54 }
 0xee9   : > { %v1448_v52 = vpop.xlane.xlu2 %1447 }
 0xeea   : > { %2487 = vrcp.f32 %v1448_v52 }
 0xeed   : > { %v1483_v53 = vpop.permute.xlu1 %1482 }
 0xeee   : > { %v1488_v43 = vsel %vm634_vm3, %v1483_v53, 0 }
 0xeef   : > { %1497 = vmatpush.bf16.msrb.mxu3 %v1488_v43 }
 0xef0   : > { %v2488_v14 = vpop.eup %2487 }
 0xef1   : > { %v1456_v59 = vmul.f32 %v2488_v14, %v2482_v19  ;;  %v1525_v5 = vpop.permute.xlu2 %1524 }
 0xef2   : > { %v1530_v29 = vsel %vm634_vm3, %v1525_v5, 0  ;;  %2298 = vmatmul.msk.bf16.vlgmr.msrb.gmra.mxu3 %vm492_vm1, %v1458_v57 }
 0xef3   : > { %1612 = vmatpush.bf16.msra.mxu3 %v3153_v15  ;;  %v1460_v62 = vpack.c.bf16 %v1456_v59, %v1456_v59  ;;  %1539 = vmatpush.bf16.msra.mxu1 %v1530_v29  ;;  %v1425_v15 = vsub.f32 %v1341_v13, %v1415_v23 }
 0xef5   : > { %v1462_v61 = vpop.permute.xlu1 %1461  ;;  %v1429_v2 = vmul.f32 1.442695, %v1425_v15 }
 0xef6   : > { %v1467_v11 = vsel %vm634_vm3, %v1462_v61, 0  ;;  %2300 = vmatmul.msk.bf16.vlgmr.msra.gmra.mxu1 %vm492_vm1, %v1460_v62 }
 0xef7   : > { %1613 = vmatpush.bf16.msra.mxu3 %v3158_v18  ;;  %1672 = vmatpush.bf16.msrb.mxu1 %v3185_v56  ;;  %2489 = vpow2.f32 %v1429_v2 }
 0xef8   : > { %1476 = vmatpush.bf16.msrb.mxu2 %v1467_v11 }
 0xefa   : > { %1503 = vrot.lane.b32.xlu0 %v3317_v40, %s2822_s5 }
 0xefb   : > { %1673 = vmatpush.bf16.msrb.mxu1 %v3187_v58 }
 0xefc   : > { %1570 = vmatpush.bf16.msra.mxu2 %v3134_v44 }
 0xefd   : > { %v2490_v18 = vpop.eup %2489 }
 0xefe   : > { %v1437_v56 = vsel %vm492_vm1, %v2490_v18, 0.0 }
 0xf00   : > { %1571 = vmatpush.bf16.msra.mxu2 %v3137_v48 }
 0xf24   : > { %1438 = vadd.xlane.f32.xlu0 %v1437_v56 }
 0xf59   : > { %v1445_v49 = vpop.xlane.xlu0 %1444 }
 0xf5a   : > { %2491 = vrcp.f32 %v1445_v49 }
 0xf60   : > { %v2492_v33 = vpop.eup %2491 }
 0xf61   : > { %v1455_v16 = vmul.f32 %v2492_v33, %v2484_v31 }
 0xf63   : > { %v1459_v58 = vpack.c.bf16 %v1455_v16, %v1455_v16 }
 0xf6c   : > { %v1504_v17 = vpop.permute.xlu0 %1503 }
 0xf6d   : > { %v1509_v44 = vsel %vm634_vm3, %v1504_v17, 0 }
 0xf6e   : > { %1518 = vmatpush.bf16.msra.mxu0 %v1509_v44 }
 0xf71   : > { %2299 = vmatmul.msk.bf16.vlgmr.msra.gmra.mxu0 %vm492_vm1, %v1459_v58 }
 0xf72   : > { %1630 = vmatpush.bf16.msrb.mxu0 %v3171_v35 }
 0xf73   : > { %v1541_v48 = vpop.f32.mrf.mxu1 }
 0xf75   : > { %v1499_v40 = vpop.f32.mrf.mxu3 }
 0xf76   : > { %1631 = vmatpush.bf16.msrb.mxu0 %v3174_v36  ;;  %1546 = vrot.lane.b32.xlu2 %v1499_v40, %s2825_s28 }
 0xf7b   : > { %v1543_v13 = vpop.f32.mrf.mxu1 }
 0xf7d   : > { %v1501_v19 = vpop.f32.mrf.mxu3 }
 0xf7e   : > { %1554 = vrot.lane.b32.xlu2 %v1541_v48, %s2826_s15 }
 0xf97   : > { %v1439_v20 = vpop.xlane.xlu0 %1438 }
 0xf98   : > { %2493 = vrcp.f32 %v1439_v20 }
 0xf9e   : > { %v2494_v47 = vpop.eup %2493 }
 0xf9f   : > { %v1453_v37 = vmul.f32 %v2494_v47, %v2490_v18 }
 0xfa1   : > { %v1457_v10 = vpack.c.bf16 %v1453_v37, %v1453_v37 }
 0xfa3   : > { %2297 = vmatmul.msk.bf16.vlgmr.msrb.gmra.mxu2 %vm492_vm1, %v1457_v10 }
 0xfa4   : > { %1689 = vmatpush.bf16.msrb.mxu2 %v3197_v0 }
 0xfa8   : > { %1690 = vmatpush.bf16.msrb.mxu2 %v3200_v1 }
 0xfd0   : > { %v1547_v31 = vpop.permute.xlu2 %1546 }
 0xfd8   : > { %v1555_v52 = vpop.permute.xlu2 %1554 }
 0xfee   : > { %v1520_v35 = vpop.f32.mrf.mxu0 }
 0xfef   : > { %1550 = vrot.lane.b32.xlu1 %v1520_v35, %s2824_s6  ;;  %v1250_v35 = vperm.slane %v3207_v7, 3 }
 0xff6   : > { %v1522_v36 = vpop.f32.mrf.mxu0 }
0x1026   : > { %v1478_v21 = vpop.f32.mrf.mxu2 }
0x1027   : > { %v1557_v25 = vsel %vm492_vm1, %v1478_v21, %v1547_v31 }
0x102e   : > { %v1480_v23 = vpop.f32.mrf.mxu2 }
0x1061   : > { %v1551_v34 = vpop.permute.xlu1 %1550 }
0x1062   : > { %v1558_v54 = vsel %vm727_vm4, %v1557_v25, %v1551_v34 }
0x1063   : > { %v1559_v53 = vsel %vm729_vm5, %v1558_v54, %v1555_v52 }
0x1064   : > { %v1560_v43 = vpack.c.bf16 %v1559_v53, %v1559_v53 }
0x1066   : > { %2301 = vmatmul.msk.bf16.vlgmr.msra.gmra.mxu2 %vm463_vm0, %v1560_v43 }
0x10e9   : > { %v1573_v0 = vpop.f32.mrf.mxu2 }
0x10ea   : > { %v1574_v1 = vadd.f32 %v1573_v0, %v732_v55 }
0x10ec   : > { %v1577_v14 = vadd.f32 %v1574_v1, %v3224_v27 }
0x10ee   : > { %v1578_v57 = vsel %vm463_vm0, %v1577_v14, 0.0 }
0x10ef   : > { %1579 = vadd.xlane.f32.xlu1 %v1578_v57 }
0x10f1   : > { %v1575_v59 = vpop.f32.mrf.mxu2 }
0x1162   : > { %v1580_v5 = vpop.xlane.xlu1 %1579 }
0x1163   : > { %v1581_v29 = vmul.f32 %v1580_v5, %v3149_v4 }
0x1165   : > { %v1582_v62 = vsub.f32 %v1577_v14, %v1581_v29 }
0x1167   : > { %v1583_v61 = vmul.f32 %v1582_v62, %v1582_v62 }
0x1169   : > { %v1584_v11 = vsel %vm463_vm0, %v1583_v61, 0.0 }
0x116a   : > { %1585 = vadd.xlane.f32.xlu2 %v1584_v11 }
0x11dd   : > { %v1586_v15 = vpop.xlane.xlu2 %1585 }
0x11de   : > { %v1587_v2 = vmul.f32 %v1586_v15, %v3149_v4 }
0x11e0   : > { %v1588_v18 = vadd.f32 1e-05, %v1587_v2 }
0x11e2   : > { %2495 = vrsqrt.f32 %v1588_v18  ;;  %vm1595_vm6 = vweird.f32 %v1588_v18 }
0x11e8   : > { %v2496_v55 = vpop.eup %2495 }
0x11e9   : > { %v1590_v56 = vmul.f32 %v2496_v55, %v1588_v18  ;;  %vm1596_vm2 = vweird.f32 %v2496_v55 }
0x11ea   : > { %vm1597_vm7 = vmor %vm1595_vm6, %vm1596_vm2 }
0x11eb   : > { %v1591_v27 = vmul.f32 %v2496_v55, %v1590_v56 }
0x11ed   : > { %v1592_v49 = vmul.f32 0.5, %v1591_v27 }
0x11ef   : > { %v1593_v33 = vsub.f32 1.5, %v1592_v49 }
0x11f1   : > { %v1594_v16 = vmul.f32 %v2496_v55, %v1593_v33 }
0x11f3   : > { %v1598_v17 = vsel %vm1597_vm7, %v2496_v55, %v1594_v16 }
0x11f4   : > { %v1599_v44 = vmul.f32 %v1598_v17, %v1582_v62 }
0x11f6   : > { %v1600_v58 = vmul.f32 %v1599_v44, %v785_v28 }
0x11f8   : > { %v1601_v48 = vadd.f32 %v1600_v58, %v787_v30  ;;  %v1270_v30 = vadd.f32 %v3380_v41, %v1250_v35 }
0x11fa   : > { %v1602_v40 = vpack.c.bf16 %v1601_v48, %v1601_v48  ;;  %v1273_v23 = vadd.f32 %v1270_v30, %v3363_v63 }
0x11fc   : > { %2302 = vmatmul.msk.bf16.vlgmr.msra.gmra.mxu3 %vm463_vm0, %v1602_v40  ;;  %v1274_v31 = vsel %vm463_vm0, %v1273_v23, 0.0  ;;  %v1296_v40 = vperm.slane %v3207_v7, 6 }
0x127f   : > { %v1615_v13 = vpop.f32.mrf.mxu3 }
0x1280   : > { %v1616_v19 = vadd.f32 %v1615_v13, %v790_v38 }
0x1282   : > { %v1619_v20 = vmax.f32 %v1616_v19, 0.0 }
0x1284   : > { %v1620_v47 = vpack.c.bf16 %v1619_v20, %v1619_v20  ;;  %v1298_v20 = vperm.slane %v3207_v7, 7 }
0x1286   : > { %2303 = vmatmul.msk.bf16.vlgmr.msrb.gmra.mxu0 %vm463_vm0, %v1620_v47 }
0x1287   : > { %v1617_v37 = vpop.f32.mrf.mxu3 }
0x1303   : > { %v1633_v10 = vpop.f32.mrf.mxu0 }
0x1304   : > { %v1634_v28 = vadd.f32 %v1633_v10, %v817_v45 }
0x1306   : > { %v1637_v36 = vadd.f32 %v1634_v28, %v1601_v48 }
0x1308   : > { %v1638_v21 = vsel %vm463_vm0, %v1637_v36, 0.0 }
0x1309   : > { %1639 = vadd.xlane.f32.xlu0 %v1638_v21 }
0x130b   : > { %v1635_v38 = vpop.f32.mrf.mxu0 }
0x1311   : > { %1275 = vadd.xlane.f32.xlu0 %v1274_v31 }
0x137c   : > { %v1640_v25 = vpop.xlane.xlu0 %1639 }
0x137d   : > { %v1641_v34 = vmul.f32 %v1640_v25, %v3149_v4 }
0x137f   : > { %v1642_v52 = vsub.f32 %v1637_v36, %v1641_v34 }
0x1381   : > { %v1643_v54 = vmul.f32 %v1642_v52, %v1642_v52 }
0x1383   : > { %v1644_v45 = vsel %vm463_vm0, %v1643_v54, 0.0 }
0x1384   : > { %1645 = vadd.xlane.f32.xlu0 %v1644_v45  ;;  %v1276_v53 = vpop.xlane.xlu0 %1275 }
0x1385   : > { %v1277_v41 = vmul.f32 %v1276_v53, %v3149_v4 }
0x1387   : > { %v1278_v43 = vsub.f32 %v1273_v23, %v1277_v41 }
0x1389   : > { %v1279_v0 = vmul.f32 %v1278_v43, %v1278_v43 }
0x138b   : > { %v1280_v1 = vsel %vm463_vm0, %v1279_v0, 0.0 }
0x138c   : > { %1281 = vadd.xlane.f32.xlu1 %v1280_v1 }
0x13f7   : > { %v1646_v63 = vpop.xlane.xlu0 %1645 }
0x13f8   : > { %v1647_v14 = vmul.f32 %v1646_v63, %v3149_v4 }
0x13fa   : > { %v1648_v57 = vadd.f32 1e-05, %v1647_v14 }
0x13fc   : > { %2497 = vrsqrt.f32 %v1648_v57  ;;  %vm1655_vm9 = vweird.f32 %v1648_v57 }
0x13ff   : > { %v1282_v59 = vpop.xlane.xlu1 %1281 }
0x1400   : > { %v1283_v5 = vmul.f32 %v1282_v59, %v3149_v4 }
0x1402   : > { %v2498_v29 = vpop.eup %2497  ;;  %v1284_v62 = vadd.f32 1e-05, %v1283_v5 }
0x1403   : > { %v1650_v61 = vmul.f32 %v2498_v29, %v1648_v57  ;;  %vm1656_vm8 = vweird.f32 %v2498_v29 }
0x1404   : > { %2499 = vrsqrt.f32 %v1284_v62  ;;  %vm1657_vm10 = vmor %vm1655_vm9, %vm1656_vm8  ;;  %vm1291_vm12 = vweird.f32 %v1284_v62 }
0x1405   : > { %v1651_v11 = vmul.f32 %v2498_v29, %v1650_v61 }
0x1407   : > { %v1652_v15 = vmul.f32 0.5, %v1651_v11 }
0x1409   : > { %v1653_v2 = vsub.f32 1.5, %v1652_v15 }
0x140a   : > { %v2500_v18 = vpop.eup %2499 }
0x140b   : > { %v1654_v55 = vmul.f32 %v2498_v29, %v1653_v2  ;;  %v1286_v56 = vmul.f32 %v2500_v18, %v1284_v62  ;;  %vm1292_vm11 = vweird.f32 %v2500_v18 }
0x140c   : > { %vm1293_vm13 = vmor %vm1291_vm12, %vm1292_vm11 }
0x140d   : > { %v1658_v27 = vsel %vm1657_vm10, %v2498_v29, %v1654_v55  ;;  %v1287_v49 = vmul.f32 %v2500_v18, %v1286_v56 }
0x140e   : > { %v1659_v33 = vmul.f32 %v1658_v27, %v1642_v52 }
0x140f   : > { %v1288_v16 = vmul.f32 0.5, %v1287_v49 }
0x1410   : > { %v1660_v17 = vmul.f32 %v1659_v33, %v863_v22 }
0x1411   : > { %v1289_v44 = vsub.f32 1.5, %v1288_v16 }
0x1412   : > { %v1661_v58 = vadd.f32 %v1660_v17, %v865_v24 }
0x1413   : > { %v1290_v48 = vmul.f32 %v2500_v18, %v1289_v44 }
0x1414   : > { %v1679_v13 = vpack.c.bf16 %v1661_v58, %v1661_v58 }
0x1415   : > { %v1294_v19 = vsel %vm1293_vm13, %v2500_v18, %v1290_v48 }
0x1416   : > { %v1295_v47 = vmul.f32 %v1294_v19, %v1278_v43  ;;  %2305 = vmatmul.msk.bf16.vlgmr.msrb.gmra.mxu2 %vm463_vm0, %v1679_v13 }
0x1418   : > { %v1297_v22 = vmul.f32 %v1296_v40, %v1295_v47 }
0x141a   : > { %v3465_v37 = vadd.f32 %v1298_v20, %v1297_v22 }
0x141c   : > { %v1662_v8 = vpack.c.bf16 %v3465_v37, %v3465_v37 }
0x141e   : > { %2304 = vmatmul.msk.bf16.vlgmr.msrb.gmra.mxu1 %vm463_vm0, %v1662_v8 }
0x1499   : > { %v1692_v24 = vpop.f32.mrf.mxu2 }
0x149a   : > { %v1693_v10 = vadd.f32 %v1692_v24, %v3234_v39 }
0x149b   : > { %v1675_v28 = vpop.f32.mrf.mxu1 }
0x149c   : > { %v3471_v36 = vpack.c.bf16 %v1693_v10, %v1693_v10  ;;  %v1676_v30 = vadd.f32 %v1675_v28, %v3212_v12 }
0x149e   : > { %v1696_v21 = vpack.c.bf16 %v1676_v30, %v1676_v30  ;;  %1706 = vrot.lane.b32.xlu1 %v3471_v36, %s2818_s20  ;;  %1710 = vrot.lane.b32.xlu2 %v3471_v36, %s2817_s29  ;;  %v1716_v38 = vsel %vm492_vm1, %v3471_v36, 0  ;;  %v1836_v30 = vunpack.c.l.b16 %v3471_v36 }
0x149f   : > { %1725 = vmatpush.bf16.xpose.msrb.mxu3 %v1716_v38 }
0x14a0   : > { %1702 = vrot.lane.b32.xlu0 %v1696_v21, %s2817_s29  ;;  %s2751_s29 = scalar_lea.hbm %s3593_s7, 16 }
0x14a1   : > { %v1694_v23 = vpop.f32.mrf.mxu2  ;;  %p2753_p10 = scmp.lt.s32.totalorder %s2751_s29, %s2747_s14 }
0x14a3   : > { %v1677_v39 = vpop.f32.mrf.mxu1  ;;  %p2754_p6 = por %p2753_p10, %p2752_p8 }
0x14a5   : > { %p2755_p11 = pnand %p2754_p6, %p2750_p1 }
0x14a6   : > { %1700 = vrot.lane.b32.xlu1 %v1696_v21, %s2819_s23  ;;  %1698 = vrot.lane.b32.xlu2 %v1696_v21, %s2818_s20 }
0x14a7   : > { %2306 = vmatmul.msk.bf16.vlgmr.msrb.gmra.mxu3 %vm492_vm1, %v1696_v21  ;;  %v1837_v21 = vpack.c.b16 %v1836_v30, %v1836_v30 }
0x14a8   : > { %1708 = vrot.lane.b32.xlu0 %v3471_v36, %s2819_s23 }
0x14f8   : > { %v1711_v12 = vpop.permute.xlu2 %1710 }
0x14f9   : > { %v1773_v31 = vsel %vm492_vm1, %v1711_v12, 0  ;;  %v1905_v47 = vunpack.c.l.b16 %v1711_v12 }
0x14fa   : > { %1782 = vmatpush.bf16.xpose.msra.mxu2 %v1773_v31 }
0x14fb   : > { %v1906_v8 = vpack.c.b16 %v1905_v47, %v1905_v47 }
0x1500   : > { %v1699_v54 = vpop.permute.xlu2 %1698 }
0x1510   : > { %v1707_v25 = vpop.permute.xlu1 %1706 }
0x1511   : > { %v1735_v34 = vsel %vm492_vm1, %v1707_v25, 0  ;;  %v1859_v22 = vunpack.c.l.b16 %v1707_v25 }
0x1512   : > { %1744 = vmatpush.bf16.xpose.msra.mxu0 %v1735_v34  ;;  %v1703_v52 = vpop.permute.xlu0 %1702 }
0x1513   : > { %2309 = vmatmul.msk.bf16.vlgmr.msra.gmra.mxu2 %vm492_vm1, %v1703_v52  ;;  %v1860_v24 = vpack.c.b16 %v1859_v22, %v1859_v22 }
0x1518   : > { %v1701_v41 = vpop.permute.xlu1 %1700 }
0x1519   : > { %2307 = vmatmul.msk.bf16.vlgmr.msra.gmra.mxu0 %vm492_vm1, %v1699_v54 }
0x151a   : > { %v1709_v45 = vpop.permute.xlu0 %1708 }
0x151b   : > { %v1754_v53 = vsel %vm492_vm1, %v1709_v45, 0  ;;  %v1882_v10 = vunpack.c.l.b16 %v1709_v45 }
0x151c   : > { %1763 = vmatpush.bf16.xpose.msra.mxu1 %v1754_v53 }
0x151d   : > { %v1883_v28 = vpack.c.b16 %v1882_v10, %v1882_v10 }
0x1523   : > { %2308 = vmatmul.msk.bf16.vlgmr.msra.gmra.mxu1 %vm492_vm1, %v1701_v41 }
0x152a   : > { %v1727_v43 = vpop.f32.mrf.mxu3 }
0x152b   : > { %v1788_v29 = vsel %vm492_vm1, %v1727_v43, -inf }
0x1532   : > { %v1729_v0 = vpop.f32.mrf.mxu3 }
0x1596   : > { %v1746_v1 = vpop.f32.mrf.mxu0  ;;  %v1784_v63 = vpop.f32.mrf.mxu2 }
0x1597   : > { %v1791_v14 = vsel %vm492_vm1, %v1746_v1, -inf  ;;  %v1797_v57 = vsel %vm492_vm1, %v1784_v63, -inf }
0x1598   : > { %1792 = vmax.xlane.f32.xlu2 %v1791_v14  ;;  %1798 = vmax.xlane.f32.xlu0 %v1797_v57 }
0x159e   : > { %v1748_v59 = vpop.f32.mrf.mxu0  ;;  %v1786_v5 = vpop.f32.mrf.mxu2 }
0x15a0   : > { %1789 = vmax.xlane.f32.xlu0 %v1788_v29  ;;  %v1765_v62 = vpop.f32.mrf.mxu1 }
0x15a1   : > { %v1794_v61 = vsel %vm492_vm1, %v1765_v62, -inf }
0x15a2   : > { %1795 = vmax.xlane.f32.xlu1 %v1794_v61 }
0x15a8   : > { %v1767_v11 = vpop.f32.mrf.mxu1 }
0x160b   : > { %v1793_v15 = vpop.xlane.xlu2 %1792  ;;  %v1799_v2 = vpop.xlane.xlu0 %1798 }
0x160c   : > { %v1801_v18 = vsub.f32 %v1746_v1, %v1793_v15  ;;  %v1803_v55 = vsub.f32 %v1784_v63, %v1799_v2 }
0x160e   : > { %v1806_v56 = vmul.f32 1.442695, %v1801_v18  ;;  %v1810_v27 = vmul.f32 1.442695, %v1803_v55 }
0x1610   : > { %2501 = vpow2.f32 %v1806_v56 }
0x1611   : > { %2503 = vpow2.f32 %v1810_v27 }
0x1613   : > { %v1790_v38 = vpop.xlane.xlu0 %1789 }
0x1614   : > { %v1800_v23 = vsub.f32 %v1727_v43, %v1790_v38 }
0x1615   : > { %v1796_v49 = vpop.xlane.xlu1 %1795 }
0x1616   : > { %v2502_v33 = vpop.eup %2501  ;;  %v1802_v16 = vsub.f32 %v1765_v62, %v1796_v49  ;;  %v1804_v39 = vmul.f32 1.442695, %v1800_v23 }
0x1617   : > { %v2504_v17 = vpop.eup %2503  ;;  %v1815_v44 = vsel %vm492_vm1, %v2502_v33, 0.0 }
0x1618   : > { %v1808_v58 = vmul.f32 1.442695, %v1802_v16  ;;  %1816 = vadd.xlane.f32.xlu1 %v1815_v44  ;;  %v1821_v48 = vsel %vm492_vm1, %v2504_v17, 0.0 }
0x1619   : > { %1822 = vadd.xlane.f32.xlu2 %v1821_v48 }
0x161a   : > { %2505 = vpow2.f32 %v1808_v58 }
0x161b   : > { %2507 = vpow2.f32 %v1804_v39 }
0x1620   : > { %v2506_v13 = vpop.eup %2505 }
0x1621   : > { %v1818_v19 = vsel %vm492_vm1, %v2506_v13, 0.0  ;;  %v2508_v12 = vpop.eup %2507 }
0x1622   : > { %1819 = vadd.xlane.f32.xlu0 %v1818_v19  ;;  %v1812_v31 = vsel %vm492_vm1, %v2508_v12, 0.0 }
0x1631   : > { %1907 = vrot.lane.b32.xlu2 %v1906_v8, %s2820_s16  ;;  %1861 = vrot.lane.b32.xlu1 %v1860_v24, %s2820_s16 }
0x1636   : > { %1884 = vrot.lane.b32.xlu0 %v1883_v28, %s2820_s16 }
0x163e   : > { %1838 = vrot.lane.b32.xlu0 %v1837_v21, %s2820_s16 }
0x165a   : > { %1813 = vadd.xlane.f32.xlu2 %v1812_v31 }
0x168b   : > { %v1817_v53 = vpop.xlane.xlu1 %1816 }
0x168c   : > { %v1823_v25 = vpop.xlane.xlu2 %1822 }
0x168d   : > { %2509 = vrcp.f32 %v1823_v25 }
0x168e   : > { %2511 = vrcp.f32 %v1817_v53 }
0x1693   : > { %v2510_v34 = vpop.eup %2509 }
0x1694   : > { %v1831_v52 = vmul.f32 %v2510_v34, %v2504_v17  ;;  %v1908_v54 = vpop.permute.xlu2 %1907  ;;  %v2512_v43 = vpop.eup %2511 }
0x1695   : > { %v1913_v45 = vsel %vm634_vm3, %v1908_v54, 0  ;;  %v1820_v41 = vpop.xlane.xlu0 %1819  ;;  %v1829_v0 = vmul.f32 %v2512_v43, %v2502_v33 }
0x1696   : > { %v1835_v36 = vpack.c.bf16 %v1831_v52, %v1831_v52  ;;  %1922 = vmatpush.bf16.msrb.mxu2 %v1913_v45  ;;  %2513 = vrcp.f32 %v1820_v41 }
0x1697   : > { %v1833_v57 = vpack.c.bf16 %v1829_v0, %v1829_v0 }
0x1699   : > { %2313 = vmatmul.msk.bf16.vlgmr.msrb.gmra.mxu2 %vm492_vm1, %v1835_v36 }
0x169c   : > { %v2514_v63 = vpop.eup %2513 }
0x169d   : > { %v1830_v59 = vmul.f32 %v2514_v63, %v2506_v13 }
0x169f   : > { %v1834_v62 = vpack.c.bf16 %v1830_v59, %v1830_v59 }
0x16a3   : > { %v1862_v1 = vpop.permute.xlu1 %1861 }
0x16a4   : > { %v1867_v14 = vsel %vm634_vm3, %v1862_v1, 0 }
0x16a5   : > { %1876 = vmatpush.bf16.msrb.mxu0 %v1867_v14 }
0x16a8   : > { %2311 = vmatmul.msk.bf16.vlgmr.msrb.gmra.mxu0 %vm492_vm1, %v1833_v57  ;;  %v1885_v5 = vpop.permute.xlu0 %1884 }
0x16a9   : > { %1995 = vmatpush.bf16.msra.mxu0 %v3295_v42  ;;  %v1890_v29 = vsel %vm634_vm3, %v1885_v5, 0 }
0x16aa   : > { %1899 = vmatpush.bf16.msrb.mxu1 %v1890_v29 }
0x16ad   : > { %1996 = vmatpush.bf16.msra.mxu0 %v3307_v26  ;;  %2312 = vmatmul.msk.bf16.vlgmr.msrb.gmra.mxu1 %vm492_vm1, %v1834_v62 }
0x16ae   : > { %2013 = vmatpush.bf16.msra.mxu1 %v3325_v32 }
0x16b0   : > { %v1839_v61 = vpop.permute.xlu0 %1838 }
0x16b1   : > { %v1844_v11 = vsel %vm634_vm3, %v1839_v61, 0 }
0x16b2   : > { %2014 = vmatpush.bf16.msra.mxu1 %v3328_v46  ;;  %1853 = vmatpush.bf16.msra.mxu3 %v1844_v11 }
0x16b6   : > { %1953 = vmatpush.bf16.msrb.mxu3 %v3292_v6 }
0x16ba   : > { %1954 = vmatpush.bf16.msrb.mxu3 %v3303_v60 }
0x16cd   : > { %v1814_v42 = vpop.xlane.xlu2 %1813 }
0x16ce   : > { %2515 = vrcp.f32 %v1814_v42 }
0x16d4   : > { %v2516_v15 = vpop.eup %2515 }
0x16d5   : > { %v1828_v2 = vmul.f32 %v2516_v15, %v2508_v12 }
0x16d7   : > { %v1832_v26 = vpack.c.bf16 %v1828_v2, %v1828_v2 }
0x16d9   : > { %2310 = vmatmul.msk.bf16.vlgmr.msra.gmra.mxu3 %vm492_vm1, %v1832_v26 }
0x171c   : > { %v1924_v32 = vpop.f32.mrf.mxu2 }
0x1724   : > { %v1926_v18 = vpop.f32.mrf.mxu2 }
0x1725   : > { %v1878_v55 = vpop.f32.mrf.mxu0 }
0x1726   : > { %1929 = vrot.lane.b32.xlu1 %v1878_v55, %s2825_s28 }
0x172a   : > { %v1901_v46 = vpop.f32.mrf.mxu1 }
0x172b   : > { %1933 = vrot.lane.b32.xlu0 %v1901_v46, %s2824_s6 }
0x172d   : > { %v1880_v56 = vpop.f32.mrf.mxu0 }
0x172e   : > { %1937 = vrot.lane.b32.xlu1 %v1924_v32, %s2826_s15 }
0x1732   : > { %v1903_v6 = vpop.f32.mrf.mxu1 }
0x175c   : > { %v1855_v60 = vpop.f32.mrf.mxu3 }
0x1764   : > { %v1857_v27 = vpop.f32.mrf.mxu3 }
0x1798   : > { %v1930_v49 = vpop.permute.xlu1 %1929 }
0x1799   : > { %v1940_v16 = vsel %vm492_vm1, %v1855_v60, %v1930_v49 }
0x179d   : > { %v1934_v33 = vpop.permute.xlu0 %1933 }
0x179e   : > { %v1941_v17 = vsel %vm727_vm4, %v1940_v16, %v1934_v33 }
0x17a0   : > { %v1938_v44 = vpop.permute.xlu1 %1937 }
0x17a1   : > { %v1942_v58 = vsel %vm729_vm5, %v1941_v17, %v1938_v44 }
0x17a2   : > { %v1943_v48 = vpack.c.bf16 %v1942_v58, %v1942_v58 }
0x17a4   : > { %2314 = vmatmul.msk.bf16.vlgmr.msrb.gmra.mxu3 %vm463_vm0, %v1943_v48 }
0x1827   : > { %v1956_v13 = vpop.f32.mrf.mxu3 }
0x1828   : > { %v1957_v19 = vadd.f32 %v1956_v13, %v1172_v51 }
0x182a   : > { %v1960_v47 = vadd.f32 %v1957_v19, %v3465_v37 }
0x182c   : > { %v1961_v22 = vsel %vm463_vm0, %v1960_v47, 0.0 }
0x182d   : > { %1962 = vadd.xlane.f32.xlu0 %v1961_v22 }
0x182f   : > { %v1958_v8 = vpop.f32.mrf.mxu3 }
0x18a0   : > { %v1963_v24 = vpop.xlane.xlu0 %1962 }
0x18a1   : > { %v1964_v10 = vmul.f32 %v1963_v24, %v3149_v4 }
0x18a3   : > { %v1965_v28 = vsub.f32 %v1960_v47, %v1964_v10 }
0x18a5   : > { %v1966_v30 = vmul.f32 %v1965_v28, %v1965_v28 }
0x18a7   : > { %v1967_v21 = vsel %vm463_vm0, %v1966_v30, 0.0 }
0x18a8   : > { %1968 = vadd.xlane.f32.xlu1 %v1967_v21 }
0x191b   : > { %v1969_v38 = vpop.xlane.xlu1 %1968 }
0x191c   : > { %v1970_v23 = vmul.f32 %v1969_v38, %v3149_v4 }
0x191e   : > { %v1971_v39 = vadd.f32 1e-05, %v1970_v23 }
0x1920   : > { %2517 = vrsqrt.f32 %v1971_v39  ;;  %vm1978_vm3 = vweird.f32 %v1971_v39 }
0x1926   : > { %v2518_v51 = vpop.eup %2517 }
0x1927   : > { %v1973_v12 = vmul.f32 %v2518_v51, %v1971_v39  ;;  %vm1979_vm1 = vweird.f32 %v2518_v51 }
0x1928   : > { %vm1980_vm4 = vmor %vm1978_vm3, %vm1979_vm1 }
0x1929   : > { %v1974_v37 = vmul.f32 %v2518_v51, %v1973_v12 }
0x192b   : > { %v1975_v31 = vmul.f32 0.5, %v1974_v37 }
0x192d   : > { %v1976_v25 = vsub.f32 1.5, %v1975_v31 }
0x192f   : > { %v1977_v34 = vmul.f32 %v2518_v51, %v1976_v25 }
0x1931   : > { %v1981_v52 = vsel %vm1980_vm4, %v2518_v51, %v1977_v34 }
0x1932   : > { %v1982_v54 = vmul.f32 %v1981_v52, %v1965_v28 }
0x1934   : > { %v1983_v45 = vmul.f32 %v1982_v54, %v1218_v50 }
0x1936   : > { %v1984_v53 = vadd.f32 %v1983_v45, %v1220_v3 }
0x1938   : > { %v1985_v36 = vpack.c.bf16 %v1984_v53, %v1984_v53 }
0x193a   : > { %2315 = vmatmul.msk.bf16.vlgmr.msra.gmra.mxu0 %vm463_vm0, %v1985_v36 }
0x19b7   : > { %v1998_v41 = vpop.f32.mrf.mxu0 }
0x19b8   : > { %v1999_v43 = vadd.f32 %v1998_v41, %v1223_v9 }
0x19ba   : > { %v2002_v0 = vmax.f32 %v1999_v43, 0.0 }
0x19bc   : > { %v2003_v1 = vpack.c.bf16 %v2002_v0, %v2002_v0 }
0x19be   : > { %2316 = vmatmul.msk.bf16.vlgmr.msra.gmra.mxu1 %vm463_vm0, %v2003_v1 }
0x19bf   : > { %v2000_v63 = vpop.f32.mrf.mxu0 }
0x1a3b   : > { %v2016_v14 = vpop.f32.mrf.mxu1 }
0x1a3c   : > { %v2017_v57 = vadd.f32 %v2016_v14, %v1250_v35 }
0x1a3e   : > { %v2020_v50 = vadd.f32 %v2017_v57, %v1984_v53 }
0x1a40   : > { %v2021_v59 = vsel %vm463_vm0, %v2020_v50, 0.0 }
0x1a41   : > { %2022 = vadd.xlane.f32.xlu2 %v2021_v59 }
0x1a43   : > { %v2018_v3 = vpop.f32.mrf.mxu1 }
0x1ab4   : > { %v2023_v5 = vpop.xlane.xlu2 %2022 }
0x1ab5   : > { %v2024_v29 = vmul.f32 %v2023_v5, %v3149_v4 }
0x1ab7   : > { %v2025_v62 = vsub.f32 %v2020_v50, %v2024_v29 }
0x1ab9   : > { %v2026_v9 = vmul.f32 %v2025_v62, %v2025_v62 }
0x1abb   : > { %v2027_v61 = vsel %vm463_vm0, %v2026_v9, 0.0 }
0x1abc   : > { %2028 = vadd.xlane.f32.xlu2 %v2027_v61 }
0x1b2f   : > { %v2029_v11 = vpop.xlane.xlu2 %2028 }
0x1b30   : > { %v2030_v42 = vmul.f32 %v2029_v11, %v3149_v4 }
0x1b32   : > { %v2031_v15 = vadd.f32 1e-05, %v2030_v42 }
0x1b34   : > { %2519 = vrsqrt.f32 %v2031_v15  ;;  %vm2038_vm14 = vweird.f32 %v2031_v15 }
0x1b3a   : > { %v2520_v35 = vpop.eup %2519 }
0x1b3b   : > { %v2033_v2 = vmul.f32 %v2520_v35, %v2031_v15  ;;  %vm2039_vm5 = vweird.f32 %v2520_v35 }
0x1b3c   : > { %vm2040_vm15 = vmor %vm2038_vm14, %vm2039_vm5 }
0x1b3d   : > { %v2034_v26 = vmul.f32 %v2520_v35, %v2033_v2 }
0x1b3f   : > { %v2035_v32 = vmul.f32 0.5, %v2034_v26 }
0x1b41   : > { %v2036_v18 = vsub.f32 1.5, %v2035_v32 }
0x1b43   : > { %v2037_v55 = vmul.f32 %v2520_v35, %v2036_v18 }
0x1b45   : > { %v2041_v4 = vsel %vm2040_vm15, %v2520_v35, %v2037_v55 }
0x1b46   : > { %v2042_v46 = vmul.f32 %v2041_v4, %v2025_v62 }
0x1b48   : > { %v2043_v56 = vmul.f32 %v2042_v46, %v1296_v40 }
0x1b4a   : > { %v2044_v6 = vadd.f32 %v2043_v56, %v1298_v20 }
0x1b4c   : > { %2045 = vst.msk [vmem:[%s432_s19] sm:$0xff] %vm463_vm0, %v2044_v6 }
0x1b4d   : > { %2758 = shalt.err (!%p2755_p11)
}
0x1b4e   : > { %2351 = dma.vmem_to_hbm [thread:$0]  (%p2941_p4), %s2060_s22, 128, %s2062_s9, %s2047_s8  }
0x1b4f PF: > { %s2073_s12 = sand.u32 1, %s2797_s24   ;;  %p3621_p13 = scmp.ge.s32.totalorder %s2809_s27, 2 }
0x1b50   : > { %s2074_s16 = scalar_lea.sflag [#allocation4], %s2073_s12 }
0x1b51   : > { %p2377_p3 = pnand %p3621_p13, %p2945_p5 }
0x1b53   : > { %p2378_p7 = pneg %p2377_p3 }
0x1b55   : > { %2792 = dma.done.wait (%p2378_p7), %s2074_s16, 128  }
0x1b56   : > { %2794 = vsyncadd (%p2378_p7), %s2074_s16, 4294967168  ;;  %s3622_s27 = sld [smem:[#allocation20_spill]]  ;;  %s3624_s24 = smov %s2801_s25 }
0x1b57   : > { %s3623_s5 = sld [smem:[#allocation21_spill]]  ;;  %s3625_s25 = smov %s2805_s26 }
0x1b5c   : > { %p25_p9 = scmp.ge.s32.totalorder %s3622_s27, 4  }
0x1b5d   : > { %s3626_s26 = smov %s3623_s5 }
0x1b5e   :  { %27 = sbr.rel (!%p25_p9) target bundleno = 15 (0xf), region = 133 }
0x1b63   :  { %2080 = vsyncpa [#allocation3], 1 }
0x1b64   :  { %2082 = vsyncpa [#allocation3 + $0x1], 1 }
0x1b65   :  { %2083 = vsyncpa [#allocation6], 1 }
0x1b66   :  { %2085 = vsyncpa [#allocation6 + $0x1], 1 }
0x1b67   :  { %2086 = vsyncpa [#allocation9], 1 }
0x1b68   :  { %2087 = vsyncpa [#allocation12], 1 }
0x1b69   :  { %2088 = vsyncpa [#allocation4], 1 }
0x1b6a   :  { %2090 = vsyncpa [#allocation4 + $0x1], 1 }

</bundles_post_ra>
